<compile_context>
chip_gen: v6e
topology: v6e:2x2x1
jax: 0.10.0
libtpu: 0.0.40
codegen_flags: <defaults>
</compile_context>

<pallas_src>
import math
from functools import partial

import jax
import jax.numpy as jnp
from jax import lax
from jax.experimental import pallas as pl
from jax.experimental.pallas import tpu as pltpu


# ----------------------------------------------------------------------------
# Pallas kernel: `bt` images per grid step, lane-dense (C, H*W) layout
# ----------------------------------------------------------------------------
def _dice_kernel(cfg,
                 x_ref, cch_ref, mch_ref, chh_ref, schh_ref, cww_ref, schw_ref,
                 b1_ref, wavg_ref, b2_ref, w1_ref, blc1_ref, w2_ref,
                 wp_ref, mproj_ref, padd_ref, o_ref):
    C = cfg["C"]; H = cfg["H"]; W = cfg["W"]
    C_out = cfg["C_out"]; C4 = cfg["C4"]; bt = cfg["bt"]
    d_c, d_w, d_h = cfg["dilation"]
    HW = H * W
    f32 = jnp.float32

    def lshift(a, s):
        # result[:, l] = a[:, (l + s) mod HW]; wrapped lanes are killed by masks.
        amt = (-s) % HW
        if amt == 0:
            return a
        return pltpu.roll(a, shift=amt, axis=1)

    # load parameters once (sliced as values inside the unrolled tap loops)
    cch = cch_ref[...]      # (C, 9)    channel-wise taps, BN scale s1[:C] folded
    mch = mch_ref[...]      # (9, HW)   channel-wise tap validity masks
    chh = chh_ref[...]      # (9, HW)   height-wise per-lane taps (w-mask folded)
    schh = schh_ref[...]    # (C, 3C)   height-wise channel shift matrix * s1[C:2C]
    cww = cww_ref[...]      # (9, HW)   width-wise per-lane taps (h-mask folded)
    schw = schw_ref[...]    # (C, 3C)   width-wise channel shift matrix * s1[2C:3C]
    b1 = b1_ref[...]        # (3C, 1)
    wavg = wavg_ref[...]    # (C, 3)    s2 folded
    b2 = b2_ref[...]        # (C, 1)
    w1 = w1_ref[...]        # (C4, C)   linear_comb conv1 (1/pool-area folded)
    blc1 = blc1_ref[...]    # (C4, 1)   pooled-border contribution
    w2 = w2_ref[...]        # (C_out, C4)
    wp = wp_ref[...]        # (C_out_pad, 9C) block-diag im2col proj weights, s3 folded
    mproj = mproj_ref[...]  # (9, HW)
    padd = padd_ref[...]    # (C_out_pad, HW) border correction + b3

    for i in range(bt):
        x = x_ref[i]                                     # (C, HW)

        # ------ channel-wise depthwise 3x3: 9 masked lane shifts + FMA -------
        acc_ch = jnp.zeros((C, HW), f32)
        for di in range(3):
            for dj in range(3):
                k = di * 3 + dj
                s = (di - 1) * d_c * W + (dj - 1) * d_c
                acc_ch = acc_ch + cch[:, k:k + 1] * (mch[k:k + 1, :] * lshift(x, s))
        br_ch = jnp.maximum(acc_ch + b1[0:C, :], 0.0)

        # ------ height-wise depthwise 3x3: lane taps (VPU) + channel matmul ---
        xw = [lshift(x, (kw - 1) * d_h) for kw in range(3)]
        ts = []
        for kc in range(3):
            t = jnp.zeros((C, HW), f32)
            for kw in range(3):
                kk = kc * 3 + kw
                t = t + chh[kk:kk + 1, :] * xw[kw]
            ts.append(t)
        t_stack = jnp.concatenate(ts, axis=0)                        # (3C, HW)
        acc_h = jnp.dot(schh, t_stack, preferred_element_type=f32)   # (C, HW)
        br_h = jnp.maximum(acc_h + b1[C:2 * C, :], 0.0)

        # ------ width-wise depthwise 3x3 --------------------------------------
        xh = [lshift(x, (kh - 1) * d_w * W) for kh in range(3)]
        us = []
        for kc in range(3):
            u = jnp.zeros((C, HW), f32)
            for kh in range(3):
                kk = kh * 3 + kc
                u = u + cww[kk:kk + 1, :] * xh[kh]
            us.append(u)
        u_stack = jnp.concatenate(us, axis=0)                        # (3C, HW)
        acc_w = jnp.dot(schw, u_stack, preferred_element_type=f32)   # (C, HW)
        br_w = jnp.maximum(acc_w + b1[2 * C:3 * C, :], 0.0)

        # ------ shuffle(3) + grouped 1x1 weight-avg conv + BN + ReLU ----------
        pre = jnp.maximum(wavg[:, 0:1] * br_ch + wavg[:, 1:2] * br_h
                          + wavg[:, 2:3] * br_w + b2, 0.0)           # (C, HW)

        # ------ linear_comb_layer (kept on the VPU; sigmoid -> EUP) -----------
        # global mean over the padding=1-extended map is folded into w1/blc1.
        ssum = jnp.sum(pre, axis=1, keepdims=True)                   # (C, 1)
        acc1 = blc1
        for c in range(C):
            acc1 = acc1 + w1[:, c:c + 1] * ssum[c:c + 1, :]
        h1 = jnp.maximum(acc1, 0.0)                                  # (C4, 1)
        acc2 = jnp.zeros((C_out, 1), f32)
        for j in range(C4):
            acc2 = acc2 + w2[:, j:j + 1] * h1[j:j + 1, :]
        gates = jax.nn.sigmoid(acc2)                                 # (C_out, 1)

        # ------ grouped 3x3 projection conv: im2col + one MXU matmul ----------
        pieces = []
        for di in range(3):
            for dj in range(3):
                k = di * 3 + dj
                s = (di - 1) * W + (dj - 1)
                pieces.append(mproj[k:k + 1, :] * lshift(pre, s))
        patches = jnp.concatenate(pieces, axis=0)                    # (9C, HW)
        proj = jnp.dot(wp, patches, preferred_element_type=f32)      # (C_out_pad, HW)
        out_full = jnp.maximum(proj + padd, 0.0)                     # BN shift + ReLU
        o_ref[i] = out_full[:C_out, :] * gates


# ----------------------------------------------------------------------------
# host-side parameter packaging (plain-JAX glue, runs once at trace time)
# ----------------------------------------------------------------------------
def prepare_params(raw, cfg):
    C, H, W = cfg["C"], cfg["H"], cfg["W"]
    C_out, G = cfg["C_out"], cfg["G"]
    d_c, d_w, d_h = cfg["dilation"]
    HW = H * W
    C4 = C // 4
    Cin_g, Cout_g = C // G, C_out // G
    C_out_pad = ((C_out + 7) // 8) * 8
    f32 = jnp.float32

    h_idx = jnp.arange(HW, dtype=jnp.int32) // W
    w_idx = jnp.arange(HW, dtype=jnp.int32) % W

    s1, b1 = raw["s1"], raw["b1"]
    s2, b2 = raw["s2"], raw["b2"]
    s3, b3 = raw["s3"], raw["b3"]
    w_ch = raw["w_ch"].reshape(C, 3, 3)
    w_h = raw["w_h"].reshape(H, 3, 3)
    w_w = raw["w_w"].reshape(W, 3, 3)
    w_avg = raw["w_avg"].reshape(C, 3)
    w_proj = raw["w_proj"].reshape(C_out, Cin_g, 3, 3)
    w_lc1 = raw["w_lc1"].reshape(C4, C)
    w_lc2 = raw["w_lc2"].reshape(C_out, C4)

    def lane_mask(oi, oj):
        ok = ((h_idx + oi >= 0) & (h_idx + oi < H) &
              (w_idx + oj >= 0) & (w_idx + oj < W))
        return ok.astype(f32)

    # channel-wise conv: per-channel taps (s1[:C] folded) + lane validity masks
    cch = jnp.stack([s1[:C] * w_ch[:, di, dj]
                     for di in range(3) for dj in range(3)], axis=1)       # (C, 9)
    mch = jnp.stack([lane_mask((di - 1) * d_c, (dj - 1) * d_c)
                     for di in range(3) for dj in range(3)], axis=0)       # (9, HW)

    # height-wise conv: per-lane taps (W-boundary mask folded) + channel shift/scale
    chh = jnp.stack([w_h[h_idx, kc, kw] * lane_mask(0, (kw - 1) * d_h)
                     for kc in range(3) for kw in range(3)], axis=0)       # (9, HW)
    schh = jnp.concatenate(
        [s1[C:2 * C, None] * jnp.eye(C, C, k=(kc - 1) * d_h, dtype=f32)
         for kc in range(3)], axis=1)                                      # (C, 3C)

    # width-wise conv: per-lane taps (H-boundary mask folded) + channel shift/scale
    cww = jnp.stack([w_w[w_idx, kh, kc] * lane_mask((kh - 1) * d_w, 0)
                     for kh in range(3) for kc in range(3)], axis=0)       # (9, HW)
    schw = jnp.concatenate(
        [s1[2 * C:3 * C, None] * jnp.eye(C, C, k=(kc - 1) * d_w, dtype=f32)
         for kc in range(3)], axis=1)                                      # (C, 3C)

    # shuffle(3) + grouped 1x1 weight-avg conv, s2 folded
    wavg_f = s2[:, None] * w_avg                                           # (C, 3)

    # linear_comb_layer: mean over the padding=1 map whose border is relu(b2);
    # fold 1/area and the border term into the first 1x1 conv.
    Hp, Wp_sz = H + 2, W + 2
    inv_area = 1.0 / float(Hp * Wp_sz)
    relu_b2 = jnp.maximum(b2, 0.0)
    pool_bias = (Hp * Wp_sz - HW) * inv_area * relu_b2                     # (C,)
    w1f = w_lc1 * inv_area                                                 # (C4, C)
    blc1 = (w_lc1 @ pool_bias)[:, None]                                    # (C4, 1)

    # grouped 3x3 projection conv -> block-diagonal im2col weights (s3 folded),
    # plus the additive correction for taps reading the relu(b2) border.
    mproj = jnp.stack([lane_mask(di - 1, dj - 1)
                       for di in range(3) for dj in range(3)], axis=0)     # (9, HW)
    rows = []
    for oc in range(C_out):
        g = oc // Cout_g
        row = jnp.zeros((9, C), f32)
        row = row.at[:, g * Cin_g:(g + 1) * Cin_g].set(
            jnp.transpose(w_proj[oc].reshape(Cin_g, 9), (1, 0)))
        rows.append(s3[oc] * row.reshape(9 * C))
    wp = jnp.stack(rows, axis=0)                                           # (C_out, 9C)

    corr = jnp.zeros((C_out, HW), f32)
    for k in range(9):
        contrib = wp[:, k * C:(k + 1) * C] @ relu_b2                       # (C_out,)
        corr = corr + contrib[:, None] * (1.0 - mproj[k])[None, :]
    proj_add = corr + b3[:, None]                                          # (C_out, HW)

    # pad the projection output-channel dim to a sublane multiple for the MXU
    pad = C_out_pad - C_out
    wp_p = jnp.pad(wp, ((0, pad), (0, 0)))
    padd_p = jnp.pad(proj_add, ((0, pad), (0, 0)))

    return dict(cch=cch, mch=mch, chh=chh, schh=schh, cww=cww, schw=schw,
                b1=b1[:, None], wavg=wavg_f, b2=b2[:, None],
                w1=w1f, blc1=blc1, w2=w_lc2,
                wp=wp_p, mproj=mproj, padd=padd_p)


# ----------------------------------------------------------------------------
# wrapper
# ----------------------------------------------------------------------------
def dice_forward(x_flat, params, cfg, batch_block=1):
    """x_flat: (B, C, H*W) lane-dense input. Returns (B, C_out, H*W) float32.

    batch_block=1 keeps one image per grid step (parallel over batch -> both
    v7x TensorCores); on single-TC v5e/v6e, batch_block=B merges the batch into
    one block to remove per-step overhead.  Per-block VMEM footprint is KB-scale,
    far under the 64 MiB v7x budget.
    """
    B = x_flat.shape[0]
    C, H, W, C_out = cfg["C"], cfg["H"], cfg["W"], cfg["C_out"]
    HW = H * W
    bt = batch_block
    assert B % bt == 0

    kcfg = dict(cfg)
    kcfg["C4"] = C // 4
    kcfg["bt"] = bt

    order = ["cch", "mch", "chh", "schh", "cww", "schw", "b1", "wavg",
             "b2", "w1", "blc1", "w2", "wp", "mproj", "padd"]

    def rep_spec(a):
        return pl.BlockSpec(a.shape, lambda b, _n=a.ndim: (0,) * _n)

    in_specs = [pl.BlockSpec((bt, C, HW), lambda b: (b, 0, 0))]
    in_specs += [rep_spec(params[name]) for name in order]
    out_specs = pl.BlockSpec((bt, C_out, HW), lambda b: (b, 0, 0))

    return pl.pallas_call(
        partial(_dice_kernel, kcfg),
        out_shape=jax.ShapeDtypeStruct((B, C_out, HW), jnp.float32),
        grid=(B // bt,),
        in_specs=in_specs,
        out_specs=out_specs,
        compiler_params=pltpu.CompilerParams(dimension_semantics=("parallel",)),
    )(x_flat, *[params[name] for name in order])


# ----------------------------------------------------------------------------
# pure-JAX reference (lax.conv based) for validation
# ----------------------------------------------------------------------------
def _depthwise(x, w, dil):
    p = dil  # (k-1)/2 * dil with k=3
    return lax.conv_general_dilated(
        x, w, window_strides=(1, 1), padding=[(p, p), (p, p)],
        rhs_dilation=(dil, dil),
        dimension_numbers=("NCHW", "OIHW", "NCHW"),
        feature_group_count=x.shape[1],
        precision=lax.Precision.HIGHEST)


def dice_ref(x, raw, cfg):
    C, H, W = cfg["C"], cfg["H"], cfg["W"]
    C_out, G = cfg["C_out"], cfg["G"]
    d = cfg["dilation"]
    relu = jax.nn.relu
    dn = ("NCHW", "OIHW", "NCHW")
    hp = lax.Precision.HIGHEST

    out_ch = _depthwise(x, raw["w_ch"], d[0])
    xh = jnp.transpose(x, (0, 2, 1, 3))
    out_h = jnp.transpose(_depthwise(xh, raw["w_h"], d[2]), (0, 2, 1, 3))
    xw = jnp.transpose(x, (0, 3, 2, 1))
    out_w = jnp.transpose(_depthwise(xw, raw["w_w"], d[1]), (0, 3, 2, 1))

    cat = jnp.concatenate([out_ch, out_h, out_w], axis=1)
    cat = relu(cat * raw["s1"][None, :, None, None] + raw["b1"][None, :, None, None])

    B = x.shape[0]
    shuf = cat.reshape(B, 3, C, H, W).transpose(0, 2, 1, 3, 4).reshape(B, 3 * C, H, W)

    avg = lax.conv_general_dilated(shuf, raw["w_avg"], (1, 1), [(1, 1), (1, 1)],
                                   dimension_numbers=dn, feature_group_count=C,
                                   precision=hp)
    pre = relu(avg * raw["s2"][None, :, None, None] + raw["b2"][None, :, None, None])

    pooled = jnp.mean(pre, axis=(2, 3), keepdims=True)
    h1 = relu(lax.conv_general_dilated(pooled, raw["w_lc1"], (1, 1), "VALID",
                                       dimension_numbers=dn, precision=hp))
    lw = jax.nn.sigmoid(lax.conv_general_dilated(h1, raw["w_lc2"], (1, 1), "VALID",
                                                 dimension_numbers=dn, precision=hp))

    proj = lax.conv_general_dilated(pre, raw["w_proj"], (1, 1), "VALID",
                                    dimension_numbers=dn, feature_group_count=G,
                                    precision=hp)
    proj = relu(proj * raw["s3"][None, :, None, None] + raw["b3"][None, :, None, None])
    return proj * lw


# ----------------------------------------------------------------------------
# main
# ----------------------------------------------------------------------------
if __name__ == "__main__":
    B, C, C_out, H, W = 2, 8, 12, 16, 16
    dilation = (1, 1, 1)
    G = math.gcd(C, C_out)
    C4 = C // 4
    cfg = dict(C=C, H=H, W=W, C_out=C_out, G=G, dilation=dilation)

    key = jax.random.PRNGKey(0)
    keys = jax.random.split(key, 12)

    def rnd(k, shape, scale=0.2):
        return scale * jax.random.normal(k, shape, dtype=jnp.float32)

    def bn_params(k, n):
        k1, k2, k3, k4 = jax.random.split(k, 4)
        gamma = 1.0 + 0.1 * jax.random.normal(k1, (n,), jnp.float32)
        beta = 0.1 * jax.random.normal(k2, (n,), jnp.float32)
        mean = 0.1 * jax.random.normal(k3, (n,), jnp.float32)
        var = jax.random.uniform(k4, (n,), jnp.float32, minval=0.5, maxval=1.5)
        scale = gamma / jnp.sqrt(var + 1e-5)
        shift = beta - mean * scale
        return scale, shift

    raw = {
        "w_ch": rnd(keys[0], (C, 1, 3, 3)),
        "w_h": rnd(keys[1], (H, 1, 3, 3)),
        "w_w": rnd(keys[2], (W, 1, 3, 3)),
        "w_avg": rnd(keys[3], (C, 3, 1, 1)),
        "w_proj": rnd(keys[4], (C_out, C // G, 3, 3)),
        "w_lc1": rnd(keys[5], (C4, C, 1, 1)),
        "w_lc2": rnd(keys[6], (C_out, C4, 1, 1)),
    }
    raw["s1"], raw["b1"] = bn_params(keys[7], 3 * C)
    raw["s2"], raw["b2"] = bn_params(keys[8], C)
    raw["s3"], raw["b3"] = bn_params(keys[9], C_out)

    x = jax.random.normal(keys[10], (B, C, H, W), jnp.float32)

    params = prepare_params(raw, cfg)

    out_flat = dice_forward(x.reshape(B, C, H * W), params, cfg, batch_block=1)
    out_flat = jax.block_until_ready(out_flat)
    out = out_flat.reshape(B, C_out, H, W)

    ref = dice_ref(x, raw, cfg)
    assert out.shape == (B, C_out, H, W), out.shape
    max_err = float(jnp.max(jnp.abs(out - ref)))
    assert max_err < 1e-4, f"kernel/reference mismatch, max_err={max_err}"

    print("KERNEL_OK")
</pallas_src>

<mosaic_0001>
module attributes {stable_mosaic.version = 11 : i64} {
  func.func @_dice_kernel(%arg0: i32, %arg1: memref<1x8x256xf32, #tpu.memory_space<vmem>>, %arg2: memref<8x9xf32, #tpu.memory_space<vmem>>, %arg3: memref<9x256xf32, #tpu.memory_space<vmem>>, %arg4: memref<9x256xf32, #tpu.memory_space<vmem>>, %arg5: memref<8x24xf32, #tpu.memory_space<vmem>>, %arg6: memref<9x256xf32, #tpu.memory_space<vmem>>, %arg7: memref<8x24xf32, #tpu.memory_space<vmem>>, %arg8: memref<24x1xf32, #tpu.memory_space<vmem>>, %arg9: memref<8x3xf32, #tpu.memory_space<vmem>>, %arg10: memref<8x1xf32, #tpu.memory_space<vmem>>, %arg11: memref<2x8xf32, #tpu.memory_space<vmem>>, %arg12: memref<2x1xf32, #tpu.memory_space<vmem>>, %arg13: memref<12x2xf32, #tpu.memory_space<vmem>>, %arg14: memref<16x72xf32, #tpu.memory_space<vmem>>, %arg15: memref<9x256xf32, #tpu.memory_space<vmem>>, %arg16: memref<16x256xf32, #tpu.memory_space<vmem>>, %arg17: memref<1x12x256xf32, #tpu.memory_space<vmem>>) attributes {dimension_semantics = [#tpu.dimension_semantics<parallel>], iteration_bounds = array<i64: 2>, scalar_prefetch = 0 : i64, scratch_operands = 0 : i64, tpu.core_type = #tpu.core_type<tc>, window_params = [{transform_indices = @transform_0, window_bounds = array<i64: 1, 8, 256>}, {pipeline_mode = #tpu.pipeline_mode<synchronous>, transform_indices = @transform_1, window_bounds = array<i64: 8, 9>}, {pipeline_mode = #tpu.pipeline_mode<synchronous>, transform_indices = @transform_2, window_bounds = array<i64: 9, 256>}, {pipeline_mode = #tpu.pipeline_mode<synchronous>, transform_indices = @transform_3, window_bounds = array<i64: 9, 256>}, {pipeline_mode = #tpu.pipeline_mode<synchronous>, transform_indices = @transform_4, window_bounds = array<i64: 8, 24>}, {pipeline_mode = #tpu.pipeline_mode<synchronous>, transform_indices = @transform_5, window_bounds = array<i64: 9, 256>}, {pipeline_mode = #tpu.pipeline_mode<synchronous>, transform_indices = @transform_6, window_bounds = array<i64: 8, 24>}, {pipeline_mode = #tpu.pipeline_mode<synchronous>, transform_indices = @transform_7, window_bounds = array<i64: 24, 1>}, {pipeline_mode = #tpu.pipeline_mode<synchronous>, transform_indices = @transform_8, window_bounds = array<i64: 8, 3>}, {pipeline_mode = #tpu.pipeline_mode<synchronous>, transform_indices = @transform_9, window_bounds = array<i64: 8, 1>}, {pipeline_mode = #tpu.pipeline_mode<synchronous>, transform_indices = @transform_10, window_bounds = array<i64: 2, 8>}, {pipeline_mode = #tpu.pipeline_mode<synchronous>, transform_indices = @transform_11, window_bounds = array<i64: 2, 1>}, {pipeline_mode = #tpu.pipeline_mode<synchronous>, transform_indices = @transform_12, window_bounds = array<i64: 12, 2>}, {pipeline_mode = #tpu.pipeline_mode<synchronous>, transform_indices = @transform_13, window_bounds = array<i64: 16, 72>}, {pipeline_mode = #tpu.pipeline_mode<synchronous>, transform_indices = @transform_14, window_bounds = array<i64: 9, 256>}, {pipeline_mode = #tpu.pipeline_mode<synchronous>, transform_indices = @transform_15, window_bounds = array<i64: 16, 256>}, {transform_indices = @transform_16, window_bounds = array<i64: 1, 12, 256>}]} {
    %c0 = arith.constant 0 : index
    %c0_0 = arith.constant 0 : index
    %0 = vector.load %arg2[%c0, %c0_0] : memref<8x9xf32, #tpu.memory_space<vmem>>, vector<8x9xf32>
    %c0_1 = arith.constant 0 : index
    %c0_2 = arith.constant 0 : index
    %1 = vector.load %arg3[%c0_1, %c0_2] : memref<9x256xf32, #tpu.memory_space<vmem>>, vector<9x256xf32>
    %c0_3 = arith.constant 0 : index
    %c0_4 = arith.constant 0 : index
    %2 = vector.load %arg4[%c0_3, %c0_4] : memref<9x256xf32, #tpu.memory_space<vmem>>, vector<9x256xf32>
    %c0_5 = arith.constant 0 : index
    %c0_6 = arith.constant 0 : index
    %3 = vector.load %arg5[%c0_5, %c0_6] : memref<8x24xf32, #tpu.memory_space<vmem>>, vector<8x24xf32>
    %c0_7 = arith.constant 0 : index
    %c0_8 = arith.constant 0 : index
    %4 = vector.load %arg6[%c0_7, %c0_8] : memref<9x256xf32, #tpu.memory_space<vmem>>, vector<9x256xf32>
    %c0_9 = arith.constant 0 : index
    %c0_10 = arith.constant 0 : index
    %5 = vector.load %arg7[%c0_9, %c0_10] : memref<8x24xf32, #tpu.memory_space<vmem>>, vector<8x24xf32>
    %c0_11 = arith.constant 0 : index
    %c0_12 = arith.constant 0 : index
    %6 = vector.load %arg8[%c0_11, %c0_12] : memref<24x1xf32, #tpu.memory_space<vmem>>, vector<24x1xf32>
    %c0_13 = arith.constant 0 : index
    %c0_14 = arith.constant 0 : index
    %7 = vector.load %arg9[%c0_13, %c0_14] : memref<8x3xf32, #tpu.memory_space<vmem>>, vector<8x3xf32>
    %c0_15 = arith.constant 0 : index
    %c0_16 = arith.constant 0 : index
    %8 = vector.load %arg10[%c0_15, %c0_16] : memref<8x1xf32, #tpu.memory_space<vmem>>, vector<8x1xf32>
    %c0_17 = arith.constant 0 : index
    %c0_18 = arith.constant 0 : index
    %9 = vector.load %arg11[%c0_17, %c0_18] : memref<2x8xf32, #tpu.memory_space<vmem>>, vector<2x8xf32>
    %c0_19 = arith.constant 0 : index
    %c0_20 = arith.constant 0 : index
    %10 = vector.load %arg12[%c0_19, %c0_20] : memref<2x1xf32, #tpu.memory_space<vmem>>, vector<2x1xf32>
    %c0_21 = arith.constant 0 : index
    %c0_22 = arith.constant 0 : index
    %11 = vector.load %arg13[%c0_21, %c0_22] : memref<12x2xf32, #tpu.memory_space<vmem>>, vector<12x2xf32>
    %c0_23 = arith.constant 0 : index
    %c0_24 = arith.constant 0 : index
    %12 = vector.load %arg14[%c0_23, %c0_24] : memref<16x72xf32, #tpu.memory_space<vmem>>, vector<16x72xf32>
    %c0_25 = arith.constant 0 : index
    %c0_26 = arith.constant 0 : index
    %13 = vector.load %arg15[%c0_25, %c0_26] : memref<9x256xf32, #tpu.memory_space<vmem>>, vector<9x256xf32>
    %c0_27 = arith.constant 0 : index
    %c0_28 = arith.constant 0 : index
    %14 = vector.load %arg16[%c0_27, %c0_28] : memref<16x256xf32, #tpu.memory_space<vmem>>, vector<16x256xf32>
    %c0_29 = arith.constant 0 : index
    %c0_30 = arith.constant 0 : index
    %c0_31 = arith.constant 0 : index
    %15 = vector.load %arg1[%c0_29, %c0_30, %c0_31] : memref<1x8x256xf32, #tpu.memory_space<vmem>>, vector<1x8x256xf32>
    %16 = vector.shape_cast %15 : vector<1x8x256xf32> to vector<8x256xf32>
    %cst = arith.constant 0.000000e+00 : f32
    %17 = vector.broadcast %cst : f32 to vector<8x256xf32>
    %18 = vector.extract_strided_slice %0 {offsets = [0, 0], sizes = [8, 1], strides = [1, 1]} : vector<8x9xf32> to vector<8x1xf32>
    %19 = vector.extract_strided_slice %1 {offsets = [0, 0], sizes = [1, 256], strides = [1, 1]} : vector<9x256xf32> to vector<1x256xf32>
    %c17_i32 = arith.constant 17 : i32
    %20 = tpu.dynamic_rotate %16 by %c17_i32 dim 1 : vector<8x256xf32>, i32 -> vector<8x256xf32>
    %21 = vector.broadcast %19 : vector<1x256xf32> to vector<8x256xf32>
    %22 = arith.mulf %21, %20 : vector<8x256xf32>
    %23 = vector.broadcast %18 : vector<8x1xf32> to vector<8x256xf32>
    %24 = arith.mulf %23, %22 : vector<8x256xf32>
    %25 = arith.addf %17, %24 : vector<8x256xf32>
    %26 = vector.extract_strided_slice %0 {offsets = [0, 1], sizes = [8, 1], strides = [1, 1]} : vector<8x9xf32> to vector<8x1xf32>
    %27 = vector.extract_strided_slice %1 {offsets = [1, 0], sizes = [1, 256], strides = [1, 1]} : vector<9x256xf32> to vector<1x256xf32>
    %c16_i32 = arith.constant 16 : i32
    %28 = tpu.dynamic_rotate %16 by %c16_i32 dim 1 : vector<8x256xf32>, i32 -> vector<8x256xf32>
    %29 = vector.broadcast %27 : vector<1x256xf32> to vector<8x256xf32>
    %30 = arith.mulf %29, %28 : vector<8x256xf32>
    %31 = vector.broadcast %26 : vector<8x1xf32> to vector<8x256xf32>
    %32 = arith.mulf %31, %30 : vector<8x256xf32>
    %33 = arith.addf %25, %32 : vector<8x256xf32>
    %34 = vector.extract_strided_slice %0 {offsets = [0, 2], sizes = [8, 1], strides = [1, 1]} : vector<8x9xf32> to vector<8x1xf32>
    %35 = vector.extract_strided_slice %1 {offsets = [2, 0], sizes = [1, 256], strides = [1, 1]} : vector<9x256xf32> to vector<1x256xf32>
    %c15_i32 = arith.constant 15 : i32
    %36 = tpu.dynamic_rotate %16 by %c15_i32 dim 1 : vector<8x256xf32>, i32 -> vector<8x256xf32>
    %37 = vector.broadcast %35 : vector<1x256xf32> to vector<8x256xf32>
    %38 = arith.mulf %37, %36 : vector<8x256xf32>
    %39 = vector.broadcast %34 : vector<8x1xf32> to vector<8x256xf32>
    %40 = arith.mulf %39, %38 : vector<8x256xf32>
    %41 = arith.addf %33, %40 : vector<8x256xf32>
    %42 = vector.extract_strided_slice %0 {offsets = [0, 3], sizes = [8, 1], strides = [1, 1]} : vector<8x9xf32> to vector<8x1xf32>
    %43 = vector.extract_strided_slice %1 {offsets = [3, 0], sizes = [1, 256], strides = [1, 1]} : vector<9x256xf32> to vector<1x256xf32>
    %c1_i32 = arith.constant 1 : i32
    %44 = tpu.dynamic_rotate %16 by %c1_i32 dim 1 : vector<8x256xf32>, i32 -> vector<8x256xf32>
    %45 = vector.broadcast %43 : vector<1x256xf32> to vector<8x256xf32>
    %46 = arith.mulf %45, %44 : vector<8x256xf32>
    %47 = vector.broadcast %42 : vector<8x1xf32> to vector<8x256xf32>
    %48 = arith.mulf %47, %46 : vector<8x256xf32>
    %49 = arith.addf %41, %48 : vector<8x256xf32>
    %50 = vector.extract_strided_slice %0 {offsets = [0, 4], sizes = [8, 1], strides = [1, 1]} : vector<8x9xf32> to vector<8x1xf32>
    %51 = vector.extract_strided_slice %1 {offsets = [4, 0], sizes = [1, 256], strides = [1, 1]} : vector<9x256xf32> to vector<1x256xf32>
    %52 = vector.broadcast %51 : vector<1x256xf32> to vector<8x256xf32>
    %53 = arith.mulf %52, %16 : vector<8x256xf32>
    %54 = vector.broadcast %50 : vector<8x1xf32> to vector<8x256xf32>
    %55 = arith.mulf %54, %53 : vector<8x256xf32>
    %56 = arith.addf %49, %55 : vector<8x256xf32>
    %57 = vector.extract_strided_slice %0 {offsets = [0, 5], sizes = [8, 1], strides = [1, 1]} : vector<8x9xf32> to vector<8x1xf32>
    %58 = vector.extract_strided_slice %1 {offsets = [5, 0], sizes = [1, 256], strides = [1, 1]} : vector<9x256xf32> to vector<1x256xf32>
    %c255_i32 = arith.constant 255 : i32
    %59 = tpu.dynamic_rotate %16 by %c255_i32 dim 1 : vector<8x256xf32>, i32 -> vector<8x256xf32>
    %60 = vector.broadcast %58 : vector<1x256xf32> to vector<8x256xf32>
    %61 = arith.mulf %60, %59 : vector<8x256xf32>
    %62 = vector.broadcast %57 : vector<8x1xf32> to vector<8x256xf32>
    %63 = arith.mulf %62, %61 : vector<8x256xf32>
    %64 = arith.addf %56, %63 : vector<8x256xf32>
    %65 = vector.extract_strided_slice %0 {offsets = [0, 6], sizes = [8, 1], strides = [1, 1]} : vector<8x9xf32> to vector<8x1xf32>
    %66 = vector.extract_strided_slice %1 {offsets = [6, 0], sizes = [1, 256], strides = [1, 1]} : vector<9x256xf32> to vector<1x256xf32>
    %c241_i32 = arith.constant 241 : i32
    %67 = tpu.dynamic_rotate %16 by %c241_i32 dim 1 : vector<8x256xf32>, i32 -> vector<8x256xf32>
    %68 = vector.broadcast %66 : vector<1x256xf32> to vector<8x256xf32>
    %69 = arith.mulf %68, %67 : vector<8x256xf32>
    %70 = vector.broadcast %65 : vector<8x1xf32> to vector<8x256xf32>
    %71 = arith.mulf %70, %69 : vector<8x256xf32>
    %72 = arith.addf %64, %71 : vector<8x256xf32>
    %73 = vector.extract_strided_slice %0 {offsets = [0, 7], sizes = [8, 1], strides = [1, 1]} : vector<8x9xf32> to vector<8x1xf32>
    %74 = vector.extract_strided_slice %1 {offsets = [7, 0], sizes = [1, 256], strides = [1, 1]} : vector<9x256xf32> to vector<1x256xf32>
    %c240_i32 = arith.constant 240 : i32
    %75 = tpu.dynamic_rotate %16 by %c240_i32 dim 1 : vector<8x256xf32>, i32 -> vector<8x256xf32>
    %76 = vector.broadcast %74 : vector<1x256xf32> to vector<8x256xf32>
    %77 = arith.mulf %76, %75 : vector<8x256xf32>
    %78 = vector.broadcast %73 : vector<8x1xf32> to vector<8x256xf32>
    %79 = arith.mulf %78, %77 : vector<8x256xf32>
    %80 = arith.addf %72, %79 : vector<8x256xf32>
    %81 = vector.extract_strided_slice %0 {offsets = [0, 8], sizes = [8, 1], strides = [1, 1]} : vector<8x9xf32> to vector<8x1xf32>
    %82 = vector.extract_strided_slice %1 {offsets = [8, 0], sizes = [1, 256], strides = [1, 1]} : vector<9x256xf32> to vector<1x256xf32>
    %c239_i32 = arith.constant 239 : i32
    %83 = tpu.dynamic_rotate %16 by %c239_i32 dim 1 : vector<8x256xf32>, i32 -> vector<8x256xf32>
    %84 = vector.broadcast %82 : vector<1x256xf32> to vector<8x256xf32>
    %85 = arith.mulf %84, %83 : vector<8x256xf32>
    %86 = vector.broadcast %81 : vector<8x1xf32> to vector<8x256xf32>
    %87 = arith.mulf %86, %85 : vector<8x256xf32>
    %88 = arith.addf %80, %87 : vector<8x256xf32>
    %89 = vector.extract_strided_slice %6 {offsets = [0, 0], sizes = [8, 1], strides = [1, 1]} : vector<24x1xf32> to vector<8x1xf32>
    %90 = vector.broadcast %89 : vector<8x1xf32> to vector<8x256xf32>
    %91 = arith.addf %88, %90 : vector<8x256xf32>
    %cst_32 = arith.constant 0.000000e+00 : f32
    %92 = vector.broadcast %cst_32 : f32 to vector<8x256xf32>
    %93 = arith.maximumf %91, %92 : vector<8x256xf32>
    %c1_i32_33 = arith.constant 1 : i32
    %94 = tpu.dynamic_rotate %16 by %c1_i32_33 dim 1 : vector<8x256xf32>, i32 -> vector<8x256xf32>
    %c255_i32_34 = arith.constant 255 : i32
    %95 = tpu.dynamic_rotate %16 by %c255_i32_34 dim 1 : vector<8x256xf32>, i32 -> vector<8x256xf32>
    %cst_35 = arith.constant 0.000000e+00 : f32
    %96 = vector.broadcast %cst_35 : f32 to vector<8x256xf32>
    %97 = vector.extract_strided_slice %2 {offsets = [0, 0], sizes = [1, 256], strides = [1, 1]} : vector<9x256xf32> to vector<1x256xf32>
    %98 = vector.broadcast %97 : vector<1x256xf32> to vector<8x256xf32>
    %99 = arith.mulf %98, %94 : vector<8x256xf32>
    %100 = arith.addf %96, %99 : vector<8x256xf32>
    %101 = vector.extract_strided_slice %2 {offsets = [1, 0], sizes = [1, 256], strides = [1, 1]} : vector<9x256xf32> to vector<1x256xf32>
    %102 = vector.broadcast %101 : vector<1x256xf32> to vector<8x256xf32>
    %103 = arith.mulf %102, %16 : vector<8x256xf32>
    %104 = arith.addf %100, %103 : vector<8x256xf32>
    %105 = vector.extract_strided_slice %2 {offsets = [2, 0], sizes = [1, 256], strides = [1, 1]} : vector<9x256xf32> to vector<1x256xf32>
    %106 = vector.broadcast %105 : vector<1x256xf32> to vector<8x256xf32>
    %107 = arith.mulf %106, %95 : vector<8x256xf32>
    %108 = arith.addf %104, %107 : vector<8x256xf32>
    %cst_36 = arith.constant 0.000000e+00 : f32
    %109 = vector.broadcast %cst_36 : f32 to vector<8x256xf32>
    %110 = vector.extract_strided_slice %2 {offsets = [3, 0], sizes = [1, 256], strides = [1, 1]} : vector<9x256xf32> to vector<1x256xf32>
    %111 = vector.broadcast %110 : vector<1x256xf32> to vector<8x256xf32>
    %112 = arith.mulf %111, %94 : vector<8x256xf32>
    %113 = arith.addf %109, %112 : vector<8x256xf32>
    %114 = vector.extract_strided_slice %2 {offsets = [4, 0], sizes = [1, 256], strides = [1, 1]} : vector<9x256xf32> to vector<1x256xf32>
    %115 = vector.broadcast %114 : vector<1x256xf32> to vector<8x256xf32>
    %116 = arith.mulf %115, %16 : vector<8x256xf32>
    %117 = arith.addf %113, %116 : vector<8x256xf32>
    %118 = vector.extract_strided_slice %2 {offsets = [5, 0], sizes = [1, 256], strides = [1, 1]} : vector<9x256xf32> to vector<1x256xf32>
    %119 = vector.broadcast %118 : vector<1x256xf32> to vector<8x256xf32>
    %120 = arith.mulf %119, %95 : vector<8x256xf32>
    %121 = arith.addf %117, %120 : vector<8x256xf32>
    %cst_37 = arith.constant 0.000000e+00 : f32
    %122 = vector.broadcast %cst_37 : f32 to vector<8x256xf32>
    %123 = vector.extract_strided_slice %2 {offsets = [6, 0], sizes = [1, 256], strides = [1, 1]} : vector<9x256xf32> to vector<1x256xf32>
    %124 = vector.broadcast %123 : vector<1x256xf32> to vector<8x256xf32>
    %125 = arith.mulf %124, %94 : vector<8x256xf32>
    %126 = arith.addf %122, %125 : vector<8x256xf32>
    %127 = vector.extract_strided_slice %2 {offsets = [7, 0], sizes = [1, 256], strides = [1, 1]} : vector<9x256xf32> to vector<1x256xf32>
    %128 = vector.broadcast %127 : vector<1x256xf32> to vector<8x256xf32>
    %129 = arith.mulf %128, %16 : vector<8x256xf32>
    %130 = arith.addf %126, %129 : vector<8x256xf32>
    %131 = vector.extract_strided_slice %2 {offsets = [8, 0], sizes = [1, 256], strides = [1, 1]} : vector<9x256xf32> to vector<1x256xf32>
    %132 = vector.broadcast %131 : vector<1x256xf32> to vector<8x256xf32>
    %133 = arith.mulf %132, %95 : vector<8x256xf32>
    %134 = arith.addf %130, %133 : vector<8x256xf32>
    %135 = tpu.concatenate %108, %121, %134 in 0 : vector<8x256xf32>, vector<8x256xf32>, vector<8x256xf32> -> vector<24x256xf32>
    %cst_38 = arith.constant dense<0.000000e+00> : vector<8x256xf32>
    %136 = tpu.matmul %3, %135, %cst_38 {dimension_numbers = #tpu.dot_dimension_numbers<[1], [0], [0], [1], [0, 0, 1, 1], [], []>} : vector<8x24xf32>, vector<24x256xf32>, vector<8x256xf32> -> vector<8x256xf32>
    %137 = vector.extract_strided_slice %6 {offsets = [8, 0], sizes = [8, 1], strides = [1, 1]} : vector<24x1xf32> to vector<8x1xf32>
    %138 = vector.broadcast %137 : vector<8x1xf32> to vector<8x256xf32>
    %139 = arith.addf %136, %138 : vector<8x256xf32>
    %cst_39 = arith.constant 0.000000e+00 : f32
    %140 = vector.broadcast %cst_39 : f32 to vector<8x256xf32>
    %141 = arith.maximumf %139, %140 : vector<8x256xf32>
    %c16_i32_40 = arith.constant 16 : i32
    %142 = tpu.dynamic_rotate %16 by %c16_i32_40 dim 1 : vector<8x256xf32>, i32 -> vector<8x256xf32>
    %c240_i32_41 = arith.constant 240 : i32
    %143 = tpu.dynamic_rotate %16 by %c240_i32_41 dim 1 : vector<8x256xf32>, i32 -> vector<8x256xf32>
    %cst_42 = arith.constant 0.000000e+00 : f32
    %144 = vector.broadcast %cst_42 : f32 to vector<8x256xf32>
    %145 = vector.extract_strided_slice %4 {offsets = [0, 0], sizes = [1, 256], strides = [1, 1]} : vector<9x256xf32> to vector<1x256xf32>
    %146 = vector.broadcast %145 : vector<1x256xf32> to vector<8x256xf32>
    %147 = arith.mulf %146, %142 : vector<8x256xf32>
    %148 = arith.addf %144, %147 : vector<8x256xf32>
    %149 = vector.extract_strided_slice %4 {offsets = [3, 0], sizes = [1, 256], strides = [1, 1]} : vector<9x256xf32> to vector<1x256xf32>
    %150 = vector.broadcast %149 : vector<1x256xf32> to vector<8x256xf32>
    %151 = arith.mulf %150, %16 : vector<8x256xf32>
    %152 = arith.addf %148, %151 : vector<8x256xf32>
    %153 = vector.extract_strided_slice %4 {offsets = [6, 0], sizes = [1, 256], strides = [1, 1]} : vector<9x256xf32> to vector<1x256xf32>
    %154 = vector.broadcast %153 : vector<1x256xf32> to vector<8x256xf32>
    %155 = arith.mulf %154, %143 : vector<8x256xf32>
    %156 = arith.addf %152, %155 : vector<8x256xf32>
    %cst_43 = arith.constant 0.000000e+00 : f32
    %157 = vector.broadcast %cst_43 : f32 to vector<8x256xf32>
    %158 = vector.extract_strided_slice %4 {offsets = [1, 0], sizes = [1, 256], strides = [1, 1]} : vector<9x256xf32> to vector<1x256xf32>
    %159 = vector.broadcast %158 : vector<1x256xf32> to vector<8x256xf32>
    %160 = arith.mulf %159, %142 : vector<8x256xf32>
    %161 = arith.addf %157, %160 : vector<8x256xf32>
    %162 = vector.extract_strided_slice %4 {offsets = [4, 0], sizes = [1, 256], strides = [1, 1]} : vector<9x256xf32> to vector<1x256xf32>
    %163 = vector.broadcast %162 : vector<1x256xf32> to vector<8x256xf32>
    %164 = arith.mulf %163, %16 : vector<8x256xf32>
    %165 = arith.addf %161, %164 : vector<8x256xf32>
    %166 = vector.extract_strided_slice %4 {offsets = [7, 0], sizes = [1, 256], strides = [1, 1]} : vector<9x256xf32> to vector<1x256xf32>
    %167 = vector.broadcast %166 : vector<1x256xf32> to vector<8x256xf32>
    %168 = arith.mulf %167, %143 : vector<8x256xf32>
    %169 = arith.addf %165, %168 : vector<8x256xf32>
    %cst_44 = arith.constant 0.000000e+00 : f32
    %170 = vector.broadcast %cst_44 : f32 to vector<8x256xf32>
    %171 = vector.extract_strided_slice %4 {offsets = [2, 0], sizes = [1, 256], strides = [1, 1]} : vector<9x256xf32> to vector<1x256xf32>
    %172 = vector.broadcast %171 : vector<1x256xf32> to vector<8x256xf32>
    %173 = arith.mulf %172, %142 : vector<8x256xf32>
    %174 = arith.addf %170, %173 : vector<8x256xf32>
    %175 = vector.extract_strided_slice %4 {offsets = [5, 0], sizes = [1, 256], strides = [1, 1]} : vector<9x256xf32> to vector<1x256xf32>
    %176 = vector.broadcast %175 : vector<1x256xf32> to vector<8x256xf32>
    %177 = arith.mulf %176, %16 : vector<8x256xf32>
    %178 = arith.addf %174, %177 : vector<8x256xf32>
    %179 = vector.extract_strided_slice %4 {offsets = [8, 0], sizes = [1, 256], strides = [1, 1]} : vector<9x256xf32> to vector<1x256xf32>
    %180 = vector.broadcast %179 : vector<1x256xf32> to vector<8x256xf32>
    %181 = arith.mulf %180, %143 : vector<8x256xf32>
    %182 = arith.addf %178, %181 : vector<8x256xf32>
    %183 = tpu.concatenate %156, %169, %182 in 0 : vector<8x256xf32>, vector<8x256xf32>, vector<8x256xf32> -> vector<24x256xf32>
    %cst_45 = arith.constant dense<0.000000e+00> : vector<8x256xf32>
    %184 = tpu.matmul %5, %183, %cst_45 {dimension_numbers = #tpu.dot_dimension_numbers<[1], [0], [0], [1], [0, 0, 1, 1], [], []>} : vector<8x24xf32>, vector<24x256xf32>, vector<8x256xf32> -> vector<8x256xf32>
    %185 = vector.extract_strided_slice %6 {offsets = [16, 0], sizes = [8, 1], strides = [1, 1]} : vector<24x1xf32> to vector<8x1xf32>
    %186 = vector.broadcast %185 : vector<8x1xf32> to vector<8x256xf32>
    %187 = arith.addf %184, %186 : vector<8x256xf32>
    %cst_46 = arith.constant 0.000000e+00 : f32
    %188 = vector.broadcast %cst_46 : f32 to vector<8x256xf32>
    %189 = arith.maximumf %187, %188 : vector<8x256xf32>
    %190 = vector.extract_strided_slice %7 {offsets = [0, 0], sizes = [8, 1], strides = [1, 1]} : vector<8x3xf32> to vector<8x1xf32>
    %191 = vector.broadcast %190 : vector<8x1xf32> to vector<8x256xf32>
    %192 = arith.mulf %191, %93 : vector<8x256xf32>
    %193 = vector.extract_strided_slice %7 {offsets = [0, 1], sizes = [8, 1], strides = [1, 1]} : vector<8x3xf32> to vector<8x1xf32>
    %194 = vector.broadcast %193 : vector<8x1xf32> to vector<8x256xf32>
    %195 = arith.mulf %194, %141 : vector<8x256xf32>
    %196 = arith.addf %192, %195 : vector<8x256xf32>
    %197 = vector.extract_strided_slice %7 {offsets = [0, 2], sizes = [8, 1], strides = [1, 1]} : vector<8x3xf32> to vector<8x1xf32>
    %198 = vector.broadcast %197 : vector<8x1xf32> to vector<8x256xf32>
    %199 = arith.mulf %198, %189 : vector<8x256xf32>
    %200 = arith.addf %196, %199 : vector<8x256xf32>
    %201 = vector.broadcast %8 : vector<8x1xf32> to vector<8x256xf32>
    %202 = arith.addf %200, %201 : vector<8x256xf32>
    %cst_47 = arith.constant 0.000000e+00 : f32
    %203 = vector.broadcast %cst_47 : f32 to vector<8x256xf32>
    %204 = arith.maximumf %202, %203 : vector<8x256xf32>
    %cst_48 = arith.constant dense<0.000000e+00> : vector<8xf32>
    %205 = vector.multi_reduction <add>, %204, %cst_48 [1] : vector<8x256xf32> to vector<8xf32>
    %206 = vector.shape_cast %205 : vector<8xf32> to vector<8x1xf32>
    %207 = vector.extract_strided_slice %9 {offsets = [0, 0], sizes = [2, 1], strides = [1, 1]} : vector<2x8xf32> to vector<2x1xf32>
    %208 = vector.extract_strided_slice %206 {offsets = [0, 0], sizes = [1, 1], strides = [1, 1]} : vector<8x1xf32> to vector<1x1xf32>
    %209 = vector.broadcast %208 : vector<1x1xf32> to vector<2x1xf32>
    %210 = arith.mulf %207, %209 : vector<2x1xf32>
    %211 = arith.addf %10, %210 : vector<2x1xf32>
    %212 = vector.extract_strided_slice %9 {offsets = [0, 1], sizes = [2, 1], strides = [1, 1]} : vector<2x8xf32> to vector<2x1xf32>
    %213 = vector.extract_strided_slice %206 {offsets = [1, 0], sizes = [1, 1], strides = [1, 1]} : vector<8x1xf32> to vector<1x1xf32>
    %214 = vector.broadcast %213 : vector<1x1xf32> to vector<2x1xf32>
    %215 = arith.mulf %212, %214 : vector<2x1xf32>
    %216 = arith.addf %211, %215 : vector<2x1xf32>
    %217 = vector.extract_strided_slice %9 {offsets = [0, 2], sizes = [2, 1], strides = [1, 1]} : vector<2x8xf32> to vector<2x1xf32>
    %218 = vector.extract_strided_slice %206 {offsets = [2, 0], sizes = [1, 1], strides = [1, 1]} : vector<8x1xf32> to vector<1x1xf32>
    %219 = vector.broadcast %218 : vector<1x1xf32> to vector<2x1xf32>
    %220 = arith.mulf %217, %219 : vector<2x1xf32>
    %221 = arith.addf %216, %220 : vector<2x1xf32>
    %222 = vector.extract_strided_slice %9 {offsets = [0, 3], sizes = [2, 1], strides = [1, 1]} : vector<2x8xf32> to vector<2x1xf32>
    %223 = vector.extract_strided_slice %206 {offsets = [3, 0], sizes = [1, 1], strides = [1, 1]} : vector<8x1xf32> to vector<1x1xf32>
    %224 = vector.broadcast %223 : vector<1x1xf32> to vector<2x1xf32>
    %225 = arith.mulf %222, %224 : vector<2x1xf32>
    %226 = arith.addf %221, %225 : vector<2x1xf32>
    %227 = vector.extract_strided_slice %9 {offsets = [0, 4], sizes = [2, 1], strides = [1, 1]} : vector<2x8xf32> to vector<2x1xf32>
    %228 = vector.extract_strided_slice %206 {offsets = [4, 0], sizes = [1, 1], strides = [1, 1]} : vector<8x1xf32> to vector<1x1xf32>
    %229 = vector.broadcast %228 : vector<1x1xf32> to vector<2x1xf32>
    %230 = arith.mulf %227, %229 : vector<2x1xf32>
    %231 = arith.addf %226, %230 : vector<2x1xf32>
    %232 = vector.extract_strided_slice %9 {offsets = [0, 5], sizes = [2, 1], strides = [1, 1]} : vector<2x8xf32> to vector<2x1xf32>
    %233 = vector.extract_strided_slice %206 {offsets = [5, 0], sizes = [1, 1], strides = [1, 1]} : vector<8x1xf32> to vector<1x1xf32>
    %234 = vector.broadcast %233 : vector<1x1xf32> to vector<2x1xf32>
    %235 = arith.mulf %232, %234 : vector<2x1xf32>
    %236 = arith.addf %231, %235 : vector<2x1xf32>
    %237 = vector.extract_strided_slice %9 {offsets = [0, 6], sizes = [2, 1], strides = [1, 1]} : vector<2x8xf32> to vector<2x1xf32>
    %238 = vector.extract_strided_slice %206 {offsets = [6, 0], sizes = [1, 1], strides = [1, 1]} : vector<8x1xf32> to vector<1x1xf32>
    %239 = vector.broadcast %238 : vector<1x1xf32> to vector<2x1xf32>
    %240 = arith.mulf %237, %239 : vector<2x1xf32>
    %241 = arith.addf %236, %240 : vector<2x1xf32>
    %242 = vector.extract_strided_slice %9 {offsets = [0, 7], sizes = [2, 1], strides = [1, 1]} : vector<2x8xf32> to vector<2x1xf32>
    %243 = vector.extract_strided_slice %206 {offsets = [7, 0], sizes = [1, 1], strides = [1, 1]} : vector<8x1xf32> to vector<1x1xf32>
    %244 = vector.broadcast %243 : vector<1x1xf32> to vector<2x1xf32>
    %245 = arith.mulf %242, %244 : vector<2x1xf32>
    %246 = arith.addf %241, %245 : vector<2x1xf32>
    %cst_49 = arith.constant 0.000000e+00 : f32
    %247 = vector.broadcast %cst_49 : f32 to vector<2x1xf32>
    %248 = arith.maximumf %246, %247 : vector<2x1xf32>
    %cst_50 = arith.constant 0.000000e+00 : f32
    %249 = vector.broadcast %cst_50 : f32 to vector<12x1xf32>
    %250 = vector.extract_strided_slice %11 {offsets = [0, 0], sizes = [12, 1], strides = [1, 1]} : vector<12x2xf32> to vector<12x1xf32>
    %251 = vector.extract_strided_slice %248 {offsets = [0, 0], sizes = [1, 1], strides = [1, 1]} : vector<2x1xf32> to vector<1x1xf32>
    %252 = vector.broadcast %251 : vector<1x1xf32> to vector<12x1xf32>
    %253 = arith.mulf %250, %252 : vector<12x1xf32>
    %254 = arith.addf %249, %253 : vector<12x1xf32>
    %255 = vector.extract_strided_slice %11 {offsets = [0, 1], sizes = [12, 1], strides = [1, 1]} : vector<12x2xf32> to vector<12x1xf32>
    %256 = vector.extract_strided_slice %248 {offsets = [1, 0], sizes = [1, 1], strides = [1, 1]} : vector<2x1xf32> to vector<1x1xf32>
    %257 = vector.broadcast %256 : vector<1x1xf32> to vector<12x1xf32>
    %258 = arith.mulf %255, %257 : vector<12x1xf32>
    %259 = arith.addf %254, %258 : vector<12x1xf32>
    %260 = arith.negf %259 : vector<12x1xf32>
    %261 = math.exp %260 : vector<12x1xf32>
    %cst_51 = arith.constant 1.000000e+00 : f32
    %262 = vector.broadcast %cst_51 : f32 to vector<12x1xf32>
    %263 = arith.addf %262, %261 : vector<12x1xf32>
    %264 = arith.divf %262, %263 : vector<12x1xf32>
    %265 = vector.extract_strided_slice %13 {offsets = [0, 0], sizes = [1, 256], strides = [1, 1]} : vector<9x256xf32> to vector<1x256xf32>
    %c17_i32_52 = arith.constant 17 : i32
    %266 = tpu.dynamic_rotate %204 by %c17_i32_52 dim 1 : vector<8x256xf32>, i32 -> vector<8x256xf32>
    %267 = vector.broadcast %265 : vector<1x256xf32> to vector<8x256xf32>
    %268 = arith.mulf %267, %266 : vector<8x256xf32>
    %269 = vector.extract_strided_slice %13 {offsets = [1, 0], sizes = [1, 256], strides = [1, 1]} : vector<9x256xf32> to vector<1x256xf32>
    %c16_i32_53 = arith.constant 16 : i32
    %270 = tpu.dynamic_rotate %204 by %c16_i32_53 dim 1 : vector<8x256xf32>, i32 -> vector<8x256xf32>
    %271 = vector.broadcast %269 : vector<1x256xf32> to vector<8x256xf32>
    %272 = arith.mulf %271, %270 : vector<8x256xf32>
    %273 = vector.extract_strided_slice %13 {offsets = [2, 0], sizes = [1, 256], strides = [1, 1]} : vector<9x256xf32> to vector<1x256xf32>
    %c15_i32_54 = arith.constant 15 : i32
    %274 = tpu.dynamic_rotate %204 by %c15_i32_54 dim 1 : vector<8x256xf32>, i32 -> vector<8x256xf32>
    %275 = vector.broadcast %273 : vector<1x256xf32> to vector<8x256xf32>
    %276 = arith.mulf %275, %274 : vector<8x256xf32>
    %277 = vector.extract_strided_slice %13 {offsets = [3, 0], sizes = [1, 256], strides = [1, 1]} : vector<9x256xf32> to vector<1x256xf32>
    %c1_i32_55 = arith.constant 1 : i32
    %278 = tpu.dynamic_rotate %204 by %c1_i32_55 dim 1 : vector<8x256xf32>, i32 -> vector<8x256xf32>
    %279 = vector.broadcast %277 : vector<1x256xf32> to vector<8x256xf32>
    %280 = arith.mulf %279, %278 : vector<8x256xf32>
    %281 = vector.extract_strided_slice %13 {offsets = [4, 0], sizes = [1, 256], strides = [1, 1]} : vector<9x256xf32> to vector<1x256xf32>
    %282 = vector.broadcast %281 : vector<1x256xf32> to vector<8x256xf32>
    %283 = arith.mulf %282, %204 : vector<8x256xf32>
    %284 = vector.extract_strided_slice %13 {offsets = [5, 0], sizes = [1, 256], strides = [1, 1]} : vector<9x256xf32> to vector<1x256xf32>
    %c255_i32_56 = arith.constant 255 : i32
    %285 = tpu.dynamic_rotate %204 by %c255_i32_56 dim 1 : vector<8x256xf32>, i32 -> vector<8x256xf32>
    %286 = vector.broadcast %284 : vector<1x256xf32> to vector<8x256xf32>
    %287 = arith.mulf %286, %285 : vector<8x256xf32>
    %288 = vector.extract_strided_slice %13 {offsets = [6, 0], sizes = [1, 256], strides = [1, 1]} : vector<9x256xf32> to vector<1x256xf32>
    %c241_i32_57 = arith.constant 241 : i32
    %289 = tpu.dynamic_rotate %204 by %c241_i32_57 dim 1 : vector<8x256xf32>, i32 -> vector<8x256xf32>
    %290 = vector.broadcast %288 : vector<1x256xf32> to vector<8x256xf32>
    %291 = arith.mulf %290, %289 : vector<8x256xf32>
    %292 = vector.extract_strided_slice %13 {offsets = [7, 0], sizes = [1, 256], strides = [1, 1]} : vector<9x256xf32> to vector<1x256xf32>
    %c240_i32_58 = arith.constant 240 : i32
    %293 = tpu.dynamic_rotate %204 by %c240_i32_58 dim 1 : vector<8x256xf32>, i32 -> vector<8x256xf32>
    %294 = vector.broadcast %292 : vector<1x256xf32> to vector<8x256xf32>
    %295 = arith.mulf %294, %293 : vector<8x256xf32>
    %296 = vector.extract_strided_slice %13 {offsets = [8, 0], sizes = [1, 256], strides = [1, 1]} : vector<9x256xf32> to vector<1x256xf32>
    %c239_i32_59 = arith.constant 239 : i32
    %297 = tpu.dynamic_rotate %204 by %c239_i32_59 dim 1 : vector<8x256xf32>, i32 -> vector<8x256xf32>
    %298 = vector.broadcast %296 : vector<1x256xf32> to vector<8x256xf32>
    %299 = arith.mulf %298, %297 : vector<8x256xf32>
    %300 = tpu.concatenate %268, %272, %276, %280, %283, %287, %291, %295, %299 in 0 : vector<8x256xf32>, vector<8x256xf32>, vector<8x256xf32>, vector<8x256xf32>, vector<8x256xf32>, vector<8x256xf32>, vector<8x256xf32>, vector<8x256xf32>, vector<8x256xf32> -> vector<72x256xf32>
    %cst_60 = arith.constant dense<0.000000e+00> : vector<16x256xf32>
    %301 = tpu.matmul %12, %300, %cst_60 {dimension_numbers = #tpu.dot_dimension_numbers<[1], [0], [0], [1], [0, 0, 1, 1], [], []>} : vector<16x72xf32>, vector<72x256xf32>, vector<16x256xf32> -> vector<16x256xf32>
    %302 = arith.addf %301, %14 : vector<16x256xf32>
    %cst_61 = arith.constant 0.000000e+00 : f32
    %303 = vector.broadcast %cst_61 : f32 to vector<16x256xf32>
    %304 = arith.maximumf %302, %303 : vector<16x256xf32>
    %305 = vector.extract_strided_slice %304 {offsets = [0, 0], sizes = [12, 256], strides = [1, 1]} : vector<16x256xf32> to vector<12x256xf32>
    %306 = vector.broadcast %264 : vector<12x1xf32> to vector<12x256xf32>
    %307 = arith.mulf %305, %306 : vector<12x256xf32>
    %c0_62 = arith.constant 0 : index
    %c0_63 = arith.constant 0 : index
    %c0_64 = arith.constant 0 : index
    %308 = vector.load %arg17[%c0_62, %c0_63, %c0_64] : memref<1x12x256xf32, #tpu.memory_space<vmem>>, vector<1x12x256xf32>
    %309 = vector.shape_cast %308 : vector<1x12x256xf32> to vector<12x256xf32>
    %310 = vector.shape_cast %307 : vector<12x256xf32> to vector<1x12x256xf32>
    tpu.vector_store %arg17[%c0_62, %c0_63, %c0_64], %310 {strides = array<i32>} : memref<1x12x256xf32, #tpu.memory_space<vmem>>, vector<1x12x256xf32>,
    return
  }
  func.func @transform_0(%arg0: i32) -> (i32, i32, i32) {
    %c0_i32 = arith.constant 0 : i32
    %c0_i32_0 = arith.constant 0 : i32
    %c0_i32_1 = arith.constant 0 : i32
    return %arg0, %c0_i32, %c0_i32_0 : i32, i32, i32
  }
  func.func @transform_1(%arg0: i32) -> (i32, i32) {
    %c0_i32 = arith.constant 0 : i32
    %c0_i32_0 = arith.constant 0 : i32
    %c0_i32_1 = arith.constant 0 : i32
    return %c0_i32, %c0_i32_0 : i32, i32
  }
  func.func @transform_2(%arg0: i32) -> (i32, i32) {
    %c0_i32 = arith.constant 0 : i32
    %c0_i32_0 = arith.constant 0 : i32
    %c0_i32_1 = arith.constant 0 : i32
    return %c0_i32, %c0_i32_0 : i32, i32
  }
  func.func @transform_3(%arg0: i32) -> (i32, i32) {
    %c0_i32 = arith.constant 0 : i32
    %c0_i32_0 = arith.constant 0 : i32
    %c0_i32_1 = arith.constant 0 : i32
    return %c0_i32, %c0_i32_0 : i32, i32
  }
  func.func @transform_4(%arg0: i32) -> (i32, i32) {
    %c0_i32 = arith.constant 0 : i32
    %c0_i32_0 = arith.constant 0 : i32
    %c0_i32_1 = arith.constant 0 : i32
    return %c0_i32, %c0_i32_0 : i32, i32
  }
  func.func @transform_5(%arg0: i32) -> (i32, i32) {
    %c0_i32 = arith.constant 0 : i32
    %c0_i32_0 = arith.constant 0 : i32
    %c0_i32_1 = arith.constant 0 : i32
    return %c0_i32, %c0_i32_0 : i32, i32
  }
  func.func @transform_6(%arg0: i32) -> (i32, i32) {
    %c0_i32 = arith.constant 0 : i32
    %c0_i32_0 = arith.constant 0 : i32
    %c0_i32_1 = arith.constant 0 : i32
    return %c0_i32, %c0_i32_0 : i32, i32
  }
  func.func @transform_7(%arg0: i32) -> (i32, i32) {
    %c0_i32 = arith.constant 0 : i32
    %c0_i32_0 = arith.constant 0 : i32
    %c0_i32_1 = arith.constant 0 : i32
    return %c0_i32, %c0_i32_0 : i32, i32
  }
  func.func @transform_8(%arg0: i32) -> (i32, i32) {
    %c0_i32 = arith.constant 0 : i32
    %c0_i32_0 = arith.constant 0 : i32
    %c0_i32_1 = arith.constant 0 : i32
    return %c0_i32, %c0_i32_0 : i32, i32
  }
  func.func @transform_9(%arg0: i32) -> (i32, i32) {
    %c0_i32 = arith.constant 0 : i32
    %c0_i32_0 = arith.constant 0 : i32
    %c0_i32_1 = arith.constant 0 : i32
    return %c0_i32, %c0_i32_0 : i32, i32
  }
  func.func @transform_10(%arg0: i32) -> (i32, i32) {
    %c0_i32 = arith.constant 0 : i32
    %c0_i32_0 = arith.constant 0 : i32
    %c0_i32_1 = arith.constant 0 : i32
    return %c0_i32, %c0_i32_0 : i32, i32
  }
  func.func @transform_11(%arg0: i32) -> (i32, i32) {
    %c0_i32 = arith.constant 0 : i32
    %c0_i32_0 = arith.constant 0 : i32
    %c0_i32_1 = arith.constant 0 : i32
    return %c0_i32, %c0_i32_0 : i32, i32
  }
  func.func @transform_12(%arg0: i32) -> (i32, i32) {
    %c0_i32 = arith.constant 0 : i32
    %c0_i32_0 = arith.constant 0 : i32
    %c0_i32_1 = arith.constant 0 : i32
    return %c0_i32, %c0_i32_0 : i32, i32
  }
  func.func @transform_13(%arg0: i32) -> (i32, i32) {
    %c0_i32 = arith.constant 0 : i32
    %c0_i32_0 = arith.constant 0 : i32
    %c0_i32_1 = arith.constant 0 : i32
    return %c0_i32, %c0_i32_0 : i32, i32
  }
  func.func @transform_14(%arg0: i32) -> (i32, i32) {
    %c0_i32 = arith.constant 0 : i32
    %c0_i32_0 = arith.constant 0 : i32
    %c0_i32_1 = arith.constant 0 : i32
    return %c0_i32, %c0_i32_0 : i32, i32
  }
  func.func @transform_15(%arg0: i32) -> (i32, i32) {
    %c0_i32 = arith.constant 0 : i32
    %c0_i32_0 = arith.constant 0 : i32
    %c0_i32_1 = arith.constant 0 : i32
    return %c0_i32, %c0_i32_0 : i32, i32
  }
  func.func @transform_16(%arg0: i32) -> (i32, i32, i32) {
    %c0_i32 = arith.constant 0 : i32
    %c0_i32_0 = arith.constant 0 : i32
    %c0_i32_1 = arith.constant 0 : i32
    return %arg0, %c0_i32, %c0_i32_0 : i32, i32, i32
  }
}

</mosaic_0001>

<bundles_post_ra>
// kernel: tpu_custom_call.1
= control target key start
LH: loop header
LB: loop body
LE: loop exit
PB: predicated region body
PF: predicated region fallthrough
CT: control target
= control target key end

     0   :  { %s2912_s0 = inlined_call_operand.vmem [shape: f32[2,8,256], index: 0, kind: input, shape index: {}]   ;;  %s2913_s1 = inlined_call_operand.hbm [shape: f32[8,9], index: 1, kind: input, shape index: {}]   ;;  %s2914_s2 = inlined_call_operand.vmem [shape: f32[9,256], index: 2, kind: input, shape index: {}]   ;;  %s2915_s3 = inlined_call_operand.hbm [shape: f32[9,256], index: 3, kind: input, shape index: {}]   ;;  %s2916_s4 = inlined_call_operand.hbm [shape: f32[8,24], index: 4, kind: input, shape index: {}]   ;;  %s2917_s5 = inlined_call_operand.hbm [shape: f32[9,256], index: 5, kind: input, shape index: {}]   ;;  %s2918_s6 = inlined_call_operand.hbm [shape: f32[8,24], index: 6, kind: input, shape index: {}]   ;;  %s2919_s7 = inlined_call_operand.vmem [shape: f32[24,1], index: 7, kind: input, shape index: {}]   ;;  %s2920_s8 = inlined_call_operand.vmem [shape: f32[8,3], index: 8, kind: input, shape index: {}]   ;;  %s2921_s9 = inlined_call_operand.vmem [shape: f32[8,1], index: 9, kind: input, shape index: {}]   ;;  %s2922_s10 = inlined_call_operand.vmem [shape: f32[2,8], index: 10, kind: input, shape index: {}]   ;;  %s2923_s11 = inlined_call_operand.vmem [shape: f32[2,1], index: 11, kind: input, shape index: {}]   ;;  %s2924_s12 = inlined_call_operand.vmem [shape: f32[12,2], index: 12, kind: input, shape index: {}]   ;;  %s2925_s13 = inlined_call_operand.vmem [shape: f32[16,72], index: 13, kind: input, shape index: {}]   ;;  %s2926_s14 = inlined_call_operand.hbm [shape: f32[9,256], index: 14, kind: input, shape index: {}]   ;;  %s2927_s15 = inlined_call_operand.hbm [shape: f32[16,256], index: 15, kind: input, shape index: {}]   ;;  %s2928_s16 = inlined_call_operand.vmem [shape: f32[2,12,256], index: 16, kind: output, shape index: {}]  }
   0x1   :  { %2940 = sst [smem:[#allocation17_spill]] %s2912_s0 }
   0x2   :  { %21 = vsyncpa [#allocation3], 0 }
   0x3   :  { %22 = vsyncpa [#allocation5], 0 }
   0x4   :  { %23 = vsyncpa [#allocation8], 0 }
   0x5   :  { %24 = vsyncpa [#allocation11], 0  ;;  %s2276_s21 = smov 0  }
   0x6 LB: > { %s2158_s22 = smov [#allocation4]   ;;  %s2282_s24 = sadd.s32 4294967295, %s2156_s21   ;;  %s2156_s21 = sphi %s2276_s21, %s30_s21  }
   0x7   : > { %s428_s23 = sshll.u32 %s2158_s22, 4  ;;  %p1785_p0 = scmp.ge.s32.totalorder %s2156_s21, 1  ;;  %s429_s23 = int_to_ptr.vmem [resolvable:$true] %s428_s23 }
   0x8   : > { %p402_p1 = scmp.lt.s32.totalorder %s2156_s21, 3  ;;  %p2930_p2 = scmp.eq.s32.totalorder %s2282_s24, 0 }
   0x9   : > { %s2159_s26 = smov [#allocation7]   ;;  %s2160_s29 = smov [#allocation10]  }
   0xa   : > { %p2287_p3 = pnand %p1785_p0, %p402_p1  ;;  %s452_s27 = sshll.u32 %s2159_s26, 4  ;;  %s2293_s27 = int_to_ptr.vmem [resolvable:$true] %s452_s27 }
   0xb   : > { %s497_s30 = sshll.u32 %s2160_s29, 4  ;;  %s2161_s0 = smov [#allocation2]   ;;  %s2301_s30 = int_to_ptr.vmem [resolvable:$true] %s497_s30 }
   0xc   : > { %s2941_s25 = scalar_select %p2287_p3, 1, 0 }
   0xd   : > { %p1852_p4 = pneg %p2287_p3  ;;  %s2303_s17 = sshll.u32 %s2161_s0, 4  ;;  %s416_s17 = int_to_ptr.vmem [resolvable:$true] %s2303_s17 }
   0xe   : > { %s1963_s19 = scalar_lea.vmem %s429_s23, 512  ;;  %p1971_p10 = scmp.lt.s32.totalorder %s429_s23, %s429_s23 }
   0xf   : > { %p2297_p5 = pnand %p2930_p2, %p1852_p4  ;;  %p1964_p7 = scmp.ne.s32.totalorder %s429_s23, %s1963_s19 }
  0x10   : > { %p1972_p11 = scmp.lt.s32.totalorder %s1963_s19, %s1963_s19 }
  0x11   : > { %p2307_p6 = pneg %p2297_p5 }
  0x12   : > { %p1973_p12 = por %p1972_p11, %p1971_p10 }
  0x13   : > { %p1966_p8 = pnand %p1964_p7, %p2307_p6 }
  0x15   : > { %p1967_p9 = pneg %p1966_p8 }
  0x17   : > { %p1974_p13 = pnand %p1973_p12, %p1967_p9 }
  0x19   : > { %1977 = shalt.err (!%p1974_p13)
}
  0x1a   : > { %s2929_s20 = smov 256   ;;  %s2163_s22 = smov 16  }
  0x1b   : > { %1858 = dma.hbm_to_vmem [thread:$0]  (!%p2297_p5), %s2915_s3, 512, %s429_s23, [#allocation5], %s2929_s20, %s2929_s20, %s2163_s22  }
  0x1c   : > { %s1989_s0 = scalar_lea.vmem %s2293_s27, 512  ;;  %p1997_p7 = scmp.lt.s32.totalorder %s2293_s27, %s2293_s27 }
  0x1d   : > { %p1990_p0 = scmp.ne.s32.totalorder %s2293_s27, %s1989_s0  ;;  %p1998_p8 = scmp.lt.s32.totalorder %s1989_s0, %s1989_s0 }
  0x1f   : > { %p1992_p1 = pnand %p1990_p0, %p2307_p6  ;;  %p1999_p9 = por %p1998_p8, %p1997_p7 }
  0x21   : > { %p1993_p4 = pneg %p1992_p1 }
  0x23   : > { %p2000_p10 = pnand %p1999_p9, %p1993_p4 }
  0x25   : > { %2003 = shalt.err (!%p2000_p10)
}
  0x26   : > { %1864 = dma.hbm_to_vmem [thread:$0]  (!%p2297_p5), %s2917_s5, 512, %s2293_s27, [#allocation8], %s2929_s20, %s2929_s20, %s2163_s22  }
  0x27   : > { %s2015_s23 = scalar_lea.vmem %s2301_s30, 512  ;;  %p2023_p0 = scmp.lt.s32.totalorder %s2301_s30, %s2301_s30 }
  0x28   : > { %p2016_p11 = scmp.ne.s32.totalorder %s2301_s30, %s2015_s23  ;;  %p2024_p1 = scmp.lt.s32.totalorder %s2015_s23, %s2015_s23 }
  0x2a   : > { %p2018_p12 = pnand %p2016_p11, %p2307_p6  ;;  %p2025_p4 = por %p2024_p1, %p2023_p0 }
  0x2c   : > { %p2019_p13 = pneg %p2018_p12 }
  0x2e   : > { %p2026_p7 = pnand %p2025_p4, %p2019_p13 }
  0x30   : > { %2029 = shalt.err (!%p2026_p7)
}
  0x31   : > { %1870 = dma.hbm_to_vmem [thread:$0]  (!%p2297_p5), %s2926_s14, 512, %s2301_s30, [#allocation11], %s2929_s20, %s2929_s20, %s2163_s22  }
  0x32   : > { %s2041_s27 = scalar_lea.vmem %s416_s17, 128  ;;  %p2049_p11 = scmp.lt.s32.totalorder %s416_s17, %s416_s17 }
  0x33   : > { %p2042_p8 = scmp.ne.s32.totalorder %s416_s17, %s2041_s27  ;;  %p2050_p12 = scmp.lt.s32.totalorder %s2041_s27, %s2041_s27 }
  0x35   : > { %p2044_p9 = pnand %p2042_p8, %p2307_p6  ;;  %p2051_p13 = por %p2050_p12, %p2049_p11 }
  0x37   : > { %p2045_p10 = pneg %p2044_p9 }
  0x39   : > { %p2052_p0 = pnand %p2051_p13, %p2045_p10 }
  0x3b   : > { %2055 = shalt.err (!%p2052_p0)
}
  0x3c   : > { %1855 = dma.hbm_to_vmem [thread:$0]  (!%p2297_p5), %s2913_s1, 128, %s416_s17, [#allocation3]  }
  0x3d   : > { %s2164_s23 = smov [#allocation6]   ;;  %s2165_s29 = smov [#allocation9]  }
  0x3e   : > { %s442_s30 = sshll.u32 %s2164_s23, 4  ;;  %s466_s0 = sshll.u32 %s2165_s29, 4  ;;  %s443_s30 = int_to_ptr.vmem [resolvable:$true] %s442_s30  ;;  %s467_s0 = int_to_ptr.vmem [resolvable:$true] %s466_s0 }
  0x3f   : > { %s2067_s20 = scalar_lea.vmem %s443_s30, 128  ;;  %p2075_p8 = scmp.lt.s32.totalorder %s443_s30, %s443_s30 }
  0x40   : > { %p2068_p1 = scmp.ne.s32.totalorder %s443_s30, %s2067_s20  ;;  %p2076_p9 = scmp.lt.s32.totalorder %s2067_s20, %s2067_s20 }
  0x42   : > { %p2070_p4 = pnand %p2068_p1, %p2307_p6  ;;  %p2077_p10 = por %p2076_p9, %p2075_p8 }
  0x44   : > { %p2071_p7 = pneg %p2070_p4 }
  0x46   : > { %p2078_p11 = pnand %p2077_p10, %p2071_p7 }
  0x48   : > { %2081 = shalt.err (!%p2078_p11)
}
  0x49   : > { %1861 = dma.hbm_to_vmem [thread:$0]  (!%p2297_p5), %s2916_s4, 128, %s443_s30, [#allocation5]  }
  0x4a   : > { %s2093_s17 = scalar_lea.vmem %s467_s0, 128  ;;  %p2101_p1 = scmp.lt.s32.totalorder %s467_s0, %s467_s0 }
  0x4b   : > { %p2094_p12 = scmp.ne.s32.totalorder %s467_s0, %s2093_s17  ;;  %p2102_p4 = scmp.lt.s32.totalorder %s2093_s17, %s2093_s17 }
  0x4d   : > { %p2096_p13 = pnand %p2094_p12, %p2307_p6  ;;  %p2103_p2 = por %p2102_p4, %p2101_p1 }
  0x4f   : > { %p2097_p0 = pneg %p2096_p13 }
  0x51   : > { %p2104_p3 = pnand %p2103_p2, %p2097_p0 }
  0x53   : > { %2107 = shalt.err (!%p2104_p3)
}
  0x54   : > { %1867 = dma.hbm_to_vmem [thread:$0]  (!%p2297_p5), %s2918_s6, 128, %s467_s0, [#allocation8]  }
  0x55   : > { %s2166_s23 = smov [#allocation12]  }
  0x56   : > { %s510_s30 = sshll.u32 %s2166_s23, 4  ;;  %s511_s30 = int_to_ptr.vmem [resolvable:$true] %s510_s30 }
  0x57   : > { %s2119_s29 = scalar_lea.vmem %s511_s30, 512  ;;  %p2127_p10 = scmp.lt.s32.totalorder %s511_s30, %s511_s30 }
  0x58   : > { %p2120_p7 = scmp.ne.s32.totalorder %s511_s30, %s2119_s29  ;;  %p2128_p11 = scmp.lt.s32.totalorder %s2119_s29, %s2119_s29 }
  0x5a   : > { %p2122_p8 = pnand %p2120_p7, %p2307_p6  ;;  %p2129_p12 = por %p2128_p11, %p2127_p10 }
  0x5c   : > { %p2123_p9 = pneg %p2122_p8 }
  0x5e   : > { %p2130_p2 = pnand %p2129_p12, %p2123_p9 }
  0x60   : > { %2133 = shalt.err (!%p2130_p2)
}
  0x61   : > { %s2944_s27 = smov 256   ;;  %p2945_p3 = scmp.ne.s32.totalorder %s2941_s25, 0 }
  0x62   : > { %1873 = dma.hbm_to_vmem [thread:$0]  (!%p2297_p5), %s2927_s15, 512, %s511_s30, [#allocation11], %s2944_s27, %s2944_s27, %s2163_s22  }
  0x63   : > { %534 = sbr.rel (%p2945_p3) target bundleno = 1152 (0x480), region = 84  ;;  %p2946_p6 = scmp.eq.s32.totalorder (!%p2945_p3), %s2282_s24, 0 }
  0x68   : > { %2139 = dma.done.wait (%p2946_p6), [#allocation3], 128   ;;  %p2947_p13 = pmov %p2946_p6 }
  0x69   : > { %p2948_p0 = pmov %p2946_p6 }
  0x6a   : > { %2141 = vsyncadd (%p2947_p13), [#allocation3], 4294967168 }
  0x6b   : > { %2143 = dma.done.wait (%p2948_p0), [#allocation5], 640   ;;  %p2949_p1 = pmov %p2948_p0 }
  0x6c   : > { %p2950_p4 = pmov %p2948_p0 }
  0x6d   : > { %2145 = vsyncadd (%p2949_p1), [#allocation5], 4294966656 }
  0x6e   : > { %2147 = dma.done.wait (%p2950_p4), [#allocation8], 640   ;;  %p2951_p5 = pmov %p2948_p0 }
  0x6f   : > { %p2952_p7 = pmov %p2948_p0 }
  0x70   : > { %2149 = vsyncadd (%p2951_p5), [#allocation8], 4294966656 }
  0x71   : > { %2151 = dma.done.wait (%p2952_p7), [#allocation11], 1024   ;;  %p2953_p8 = pmov %p2948_p0 }
  0x72   : > { %p608_p9 = scmp.lt.s32.totalorder %s2282_s24, 1  ;;  %v2167_v0 = vmov 1   ;;  %v2168_v1 = vmov 0   ;;  %s2954_s22 = sld [smem:[#allocation17_spill]]  ;;  %v2938_v4 = vmov 0.0   ;;  %v618_v5 = vld [vmem:[#allocation2] sm:$0xff]  ;;  %v658_v18 = vlaneseq }
  0x73   : > { %2153 = vsyncadd (%p2953_p8), [#allocation11], 4294966272  ;;  %1930 = vset.pattern.permute.xlu1 %v2167_v0  ;;  %1929 = vset.pattern.permute.xlu0 %v2168_v1  ;;  %s2169_s20 = smov 127   ;;  %s2170_s26 = smov 1   ;;  %v2175_v6 = vmov 2   ;;  %v2176_v7 = vmov 3  }
  0x74   : > { %s2965_s24 = smov (!%p608_p9, %s2282_s24), 1  ;;  %s2934_s23 = smov 16   ;;  %1065 = vmatprep.mubr.f32.mxu1 %v2938_v4  ;;  %1624 = vmatprep.mubr.f32.mxu0 %v2938_v4  ;;  %v2178_v8 = vmov 4   ;;  %v2179_v9 = vmov 6   ;;  %v2180_v10 = vmov 5   ;;  %v2181_v11 = vmov 7  }
  0x75   : > { %s1822_s25 = sshll.u32 %s2965_s24, 4  ;;  %s2173_s30 = smov 112   ;;  %v2183_v12 = vmov 8   ;;  %v633_v13 = vld [vmem:[%s2919_s7] sm:$0xff]  ;;  %v635_v14 = vld [vmem:[%s2919_s7 + $0x10] sm:$0xff]  ;;  %v634_v15 = vld [vmem:[%s2919_s7 + $0x8] sm:$0xff] }
  0x76   : > { %s2932_s29 = smov 17   ;;  %s2936_s27 = smov 15   ;;  %v636_v16 = vld [vmem:[%s2920_s8] sm:$0xff]  ;;  %v664_v19 = vshrl.u32 %v658_v18, 7  ;;  %v2469_v20 = vand.u32 127, %v658_v18  ;;  %v2475_v23 = vld [vmem:[#allocation4] sm:$0xff] }
  0x77   : > { %s2182_s19 = smov 113   ;;  %s2184_s0 = smov 111   ;;  %v637_v17 = vld [vmem:[%s2921_s9] sm:$0xff]  ;;  %v2481_v26 = vld [vmem:[#allocation7] sm:$0xff]  ;;  %v2493_v31 = vld [vmem:[#allocation7 + $0x8] sm:$0xff]  ;;  %vm997_vm4 = vcmask 195584  }
  0x78   : > { %s612_s17 = scalar_lea.vmem %s2954_s22, %s1822_s25  ;;  %v2471_v21 = vsub.s32 2, %v664_v19  ;;  %v2473_v22 = vsub.s32 5, %v664_v19  ;;  %v2477_v24 = vsub.s32 0, %v664_v19  ;;  %v2479_v25 = vsub.s32 3, %v664_v19  ;;  %v2484_v27 = vld [vmem:[#allocation4 + $0x8] sm:$0xff]  ;;  %s2186_s18 = smov 125  }
  0x79   : > { %v2411_v2 = vld [vmem:[%s612_s17] sm:$0xff]  ;;  %v2417_v3 = vld [vmem:[%s612_s17 + $0x8] sm:$0xff]  ;;  %vm779_vm0 = vcmp.lt.s32.totalorder %v2469_v20, 127  ;;  %vm736_vm1 = vcmp.lt.s32.totalorder %v2469_v20, 1  ;;  %v2487_v28 = vsub.s32 1, %v664_v19  ;;  %v2489_v29 = vsub.s32 4, %v664_v19 }
  0x7a   : > { %775 = vrot.lane.b32.xlu1 %v2411_v2, %s2169_s20  ;;  %732 = vrot.lane.b32.xlu0 %v2411_v2, %s2170_s26  ;;  %v911_v30 = vrot.slane %v2475_v23, %v2471_v21  ;;  %v1089_v32 = vrot.slane %v2481_v26, %v2479_v25  ;;  %v2497_v33 = vsub.s32 6, %v664_v19  ;;  %v2499_v34 = vsub.s32 7, %v664_v19  ;;  %v1812_v45 = vld [vmem:[#allocation7 + $0x18] ss:$0 sm:$0xff]  ;;  %s2187_s22 = smov 124   ;;  %s2188_s17 = smov 123  }
  0x7b   : > { %v947_v35 = vrot.slane %v2475_v23, %v2473_v22  ;;  %v887_v36 = vrot.slane %v2475_v23, %v2477_v24  ;;  %v923_v37 = vrot.slane %v2475_v23, %v2479_v25  ;;  %vm686_vm2 = vcmp.lt.s32.totalorder %v2469_v20, 16  ;;  %s2189_s25 = smov 122   ;;  %s2190_s28 = smov 121  }
  0x7c   : > { %v1125_v38 = vrot.slane %v2481_v26, %v2489_v29  ;;  %v915_v39 = vrot.slane %v2484_v27, %v2471_v21  ;;  %v951_v40 = vrot.slane %v2484_v27, %v2473_v22  ;;  %v891_v41 = vrot.slane %v2484_v27, %v2477_v24 }
  0x7d   : > { %v927_v42 = vrot.slane %v2484_v27, %v2479_v25  ;;  %v1081_v46 = vrot.slane %v2493_v31, %v2477_v24  ;;  %v1113_v47 = vrot.slane %v2481_v26, %v2487_v28  ;;  %v1117_v48 = vrot.slane %v2493_v31, %v2487_v28 }
  0x7e   : > { %777 = vrot.lane.b32.xlu1 %v2417_v3, %s2169_s20  ;;  %734 = vrot.lane.b32.xlu0 %v2417_v3, %s2170_s26  ;;  %v2527_v49 = vmul.f32 %v1089_v32, %v2411_v2  ;;  %v1149_v50 = vrot.slane %v2481_v26, %v2471_v21  ;;  %v1153_v51 = vrot.slane %v2493_v31, %v2471_v21  ;;  %vm829_vm3 = vcmp.lt.s32.totalorder %v2469_v20, 112 }
  0x7f   : > { %v1161_v52 = vrot.slane %v2481_v26, %v2473_v22  ;;  %v2536_v53 = vmul.f32 %v1125_v38, %v2411_v2  ;;  %v975_v55 = vrot.slane %v2484_v27, %v2499_v34  ;;  %v971_v56 = vrot.slane %v2475_v23, %v2499_v34 }
  0x80   : > { %v939_v58 = vrot.slane %v2484_v27, %v2489_v29  ;;  %v935_v59 = vrot.slane %v2475_v23, %v2489_v29  ;;  %v903_v60 = vrot.slane %v2484_v27, %v2487_v28  ;;  %vm660_vm5 = vcmp.lt.s32.totalorder %v2469_v20, 17 }
  0x81   : > { %vm711_vm6 = vcmp.lt.s32.totalorder %v2469_v20, 15  ;;  %vm804_vm7 = vcmp.lt.s32.totalorder %v2469_v20, 113  ;;  %vm854_vm8 = vcmp.lt.s32.totalorder %v2469_v20, 111  ;;  %vm1553_vm9 = vcmask 588800   ;;  %v640_v20 = vld [vmem:[%s2924_s12] sm:$0xff] }
  0x82   : > { %684 = vrot.lane.b32.xlu1 %v2417_v3, %s2934_s23  ;;  %682 = vrot.lane.b32.xlu0 %v2411_v2, %s2934_s23  ;;  %s2962_s23 = smov 16  }
  0x86   : > { %827 = vrot.lane.b32.xlu1 %v2417_v3, %s2173_s30  ;;  %825 = vrot.lane.b32.xlu0 %v2411_v2, %s2173_s30 }
  0x8a   : > { %700 = vperm.xlu1 %1930, %v618_v5   ;;  %675 = vperm.xlu0 %1929, %v618_v5  }
  0x8e   : > { %654 = vrot.lane.b32.xlu1 %v2411_v2, %s2932_s29  ;;  %656 = vrot.lane.b32.xlu0 %v2417_v3, %s2932_s29  ;;  %s2963_s29 = smov 17  }
  0x8f   : > { %1931 = vset.pattern.permute.xlu1 %v2175_v6  ;;  %1932 = vset.pattern.permute.xlu0 %v2176_v7 }
  0x92   : > { %725 = vperm.xlu1 %1931, %v618_v5   ;;  %707 = vrot.lane.b32.xlu0 %v2411_v2, %s2936_s27 }
  0x96   : > { %709 = vrot.lane.b32.xlu1 %v2417_v3, %s2936_s27  ;;  %750 = vperm.xlu0 %1932, %v618_v5   ;;  %s2185_s27 = smov 126  }
  0x97   : > { %1933 = vset.pattern.permute.xlu1 %v2178_v8  ;;  %v1166_v8 = vmul.f32 %v1161_v52, %v2411_v2 }
  0x9a   : > { %768 = vperm.xlu1 %1933, %v618_v5   ;;  %1935 = vset.pattern.permute.xlu0 %v2179_v9  ;;  %v899_v9 = vrot.slane %v2475_v23, %v2487_v28 }
  0x9b   : > { %818 = vperm.xlu0 %1935, %v618_v5  }
  0x9e   : > { %1934 = vset.pattern.permute.xlu1 %v2180_v10  ;;  %v977_v10 = vmul.f32 %v975_v55, %v2417_v3 }
  0x9f   : > { %793 = vperm.xlu1 %1934, %v618_v5   ;;  %1936 = vset.pattern.permute.xlu0 %v2181_v11  ;;  %v976_v11 = vmul.f32 %v971_v56, %v2411_v2 }
  0xa0   : > { %843 = vperm.xlu0 %1936, %v618_v5  }
  0xa3   : > { %800 = vrot.lane.b32.xlu1 %v2411_v2, %s2182_s19 }
  0xa4   : > { %1937 = vset.pattern.permute.xlu1 %v2183_v12  ;;  %852 = vrot.lane.b32.xlu0 %v2417_v3, %s2184_s0  ;;  %v1165_v12 = vrot.slane %v2493_v31, %v2473_v22 }
  0xa5   : > { %1939 = vset.pattern.permute.xlu0 %v2168_v1 }
  0xa7   : > { %802 = vrot.lane.b32.xlu1 %v2417_v3, %s2182_s19 }
  0xa8   : > { %994 = vperm.xlu0 %1939, %v634_v15   ;;  %v941_v15 = vmul.f32 %v939_v58, %v2417_v3 }
  0xab   : > { %868 = vperm.xlu1 %1937, %v618_v5   ;;  %v959_v5 = vrot.slane %v2475_v23, %v2497_v33 }
  0xac   : > { %1940 = vset.pattern.permute.xlu0 %v2167_v0 }
  0xad   : > { %1271 = vperm.xlu0 %1940, %v636_v16  }
  0xaf   : > { %850 = vrot.lane.b32.xlu1 %v2411_v2, %s2184_s0 }
  0xb0   : > { %1938 = vset.pattern.permute.xlu1 %v2168_v1 }
  0xb1   : > { %1943 = vset.pattern.permute.xlu0 %v2168_v1 }
  0xb3   : > { %877 = vperm.xlu1 %1938, %v633_v13   ;;  %v1129_v13 = vrot.slane %v2493_v31, %v2489_v29 }
  0xb7   : > { %1184 = vperm.xlu1 %1938, %v635_v14  }
  0xbb   : > { %1265 = vperm.xlu1 %1938, %v636_v16  }
  0xbf   : > { %1941 = vset.pattern.permute.xlu1 %v2175_v6 }
  0xc0   : > { %1279 = vperm.xlu1 %1941, %v636_v16   ;;  %v940_v16 = vmul.f32 %v935_v59, %v2411_v2  ;;  %v1808_v59 = vld [vmem:[#allocation4 + $0x10] ss:$0 sm:$0xff] }
  0xc4   : > { %1942 = vset.pattern.permute.xlu1 %v2168_v1  ;;  %v963_v1 = vrot.slane %v2484_v27, %v2497_v33 }
  0xc5   : > { %1288 = vperm.xlu1 %1942, %v637_v17   ;;  %v905_v17 = vmul.f32 %v903_v60, %v2417_v3 }
  0xec   : > { %v776_v43 = vpop.permute.xlu1 %775  ;;  %v733_v44 = vpop.permute.xlu0 %732 }
  0xf0   : > { %v778_v61 = vpop.permute.xlu1 %777  ;;  %v735_v62 = vpop.permute.xlu0 %734 }
  0xf1   : > { %v2563_v6 = vsel %vm736_vm1, %v733_v44, %v735_v62  ;;  %v2567_v7 = vsel %vm736_vm1, %v735_v62, %v733_v44  ;;  %v2580_v14 = vsel %vm779_vm0, %v778_v61, %v776_v43  ;;  %v1809_v44 = vld [vmem:[#allocation4 + $0x18] ss:$0 sm:$0xff]  ;;  %v2591_v56 = vsel %vm779_vm0, %v776_v43, %v778_v61 }
  0xf2   : > { %v928_v18 = vmul.f32 %v923_v37, %v2567_v7  ;;  %v929_v19 = vmul.f32 %v927_v42, %v2563_v6  ;;  %v965_v52 = vmul.f32 %v963_v1, %v2563_v6  ;;  %v964_v55 = vmul.f32 %v959_v5, %v2567_v7 }
  0xf3   : > { %v904_v37 = vmul.f32 %v899_v9, %v2411_v2  ;;  %v1093_v42 = vrot.slane %v2493_v31, %v2479_v25  ;;  %v892_v60 = vmul.f32 %v887_v36, %v2567_v7  ;;  %v1167_v1 = vmul.f32 %v1165_v12, %v2417_v3  ;;  %v1811_v36 = vld [vmem:[#allocation7 + $0x10] ss:$0 sm:$0xff] }
  0xf4   : > { %v685_v32 = vpop.permute.xlu1 %684  ;;  %v683_v38 = vpop.permute.xlu0 %682  ;;  %v1131_v43 = vmul.f32 %v1129_v13, %v2417_v3  ;;  %v893_v61 = vmul.f32 %v891_v41, %v2563_v6  ;;  %v979_v5 = vadd.f32 %v977_v10, %v965_v52  ;;  %v989_v4 = vmul.f32 %v1809_v44, %v2580_v14 }
  0xf5   : > { %v2595_v58 = vsel %vm686_vm2, %v683_v38, %v685_v32  ;;  %v2603_v62 = vsel %vm686_vm2, %v685_v32, %v683_v38  ;;  %v978_v54 = vadd.f32 %v976_v11, %v964_v55  ;;  %v988_v32 = vmul.f32 %v1808_v59, %v2591_v56  ;;  %v627_v55 = vld [vmem:[#allocation6] sm:$0xff] }
  0xf6   : > { %v1155_v9 = vmul.f32 %v1153_v51, %v2595_v58  ;;  %v943_v38 = vadd.f32 %v941_v15, %v929_v19  ;;  %v942_v0 = vadd.f32 %v940_v16, %v928_v18  ;;  %v1154_v12 = vmul.f32 %v1149_v50, %v2603_v62 }
  0xf7   : > { %v991_v11 = vadd.f32 %v989_v4, %v979_v5  ;;  %v917_v51 = vmul.f32 %v915_v39, %v2580_v14  ;;  %v952_v13 = vmul.f32 %v947_v35, %v2591_v56  ;;  %v953_v50 = vmul.f32 %v951_v40, %v2580_v14 }
  0xf8   : > { %v828_v57 = vpop.permute.xlu1 %827  ;;  %v826_v63 = vpop.permute.xlu0 %825  ;;  %v1095_v15 = vmul.f32 %v1093_v42, %v2417_v3  ;;  %v907_v16 = vadd.f32 %v905_v17, %v893_v61  ;;  %v1119_v39 = vmul.f32 %v1117_v48, %v2595_v58  ;;  %v906_v18 = vadd.f32 %v904_v37, %v892_v60 }
  0xf9   : > { %v2614_v41 = vsel %vm829_vm3, %v826_v63, %v828_v57  ;;  %v2618_v10 = vsel %vm829_vm3, %v828_v57, %v826_v63  ;;  %1027 = vmatprep.subr.mxu1 %v991_v11  ;;  %v990_v63 = vadd.f32 %v988_v32, %v978_v54  ;;  %v955_v35 = vadd.f32 %v953_v50, %v943_v38 }
  0xfa   : > { %v1178_v57 = vmul.f32 %v1811_v36, %v2614_v41  ;;  %v1179_v4 = vmul.f32 %v1812_v45, %v2618_v10  ;;  %v1169_v19 = vadd.f32 %v1167_v1, %v1155_v9  ;;  %v916_v27 = vmul.f32 %v911_v30, %v2591_v56 }
  0xfb   : > { %v1118_v40 = vmul.f32 %v1113_v47, %v2603_v62  ;;  %v1168_v45 = vadd.f32 %v1166_v8, %v1154_v12  ;;  %1028 = vmatpush1.msra.mxu1 %v990_v63  ;;  %v954_v54 = vadd.f32 %v952_v13, %v942_v0  ;;  %v1083_v48 = vmul.f32 %v1081_v46, %v2595_v58  ;;  %v632_v12 = vld [vmem:[#allocation9] sm:$0xff] }
  0xfc   : > { %v2955_v17 = vrot.slane %v2493_v31, %v2499_v34  ;;  %1029 = vmatprep.subr.mxu1 %v955_v35  ;;  %v919_v23 = vadd.f32 %v917_v51, %v907_v16  ;;  %v1181_v30 = vadd.f32 %v1179_v4, %v1169_v19  ;;  %v2956_v47 = vrot.slane %v2481_v26, %v2477_v24  ;;  %v2685_v51 = vld [vmem:[%s2914_s2 + $0x8] sm:$0xff] }
  0xfd   : > { %v2957_v0 = vrot.slane %v2481_v26, %v2499_v34  ;;  %1030 = vmatpush1.msra.mxu1 %v954_v54  ;;  %v918_v46 = vadd.f32 %v916_v27, %v906_v18  ;;  %v1180_v59 = vadd.f32 %v1178_v57, %v1168_v45  ;;  %v2958_v37 = vrot.slane %v2493_v31, %v2497_v33 }
  0xfe   : > { %v1143_v44 = vmul.f32 %v2955_v17, %v2618_v10  ;;  %v1082_v8 = vmul.f32 %v2956_v47, %v2603_v62  ;;  %1031 = vmatprep.subr.mxu1 %v919_v23  ;;  %v1133_v60 = vadd.f32 %v1131_v43, %v1119_v39  ;;  %v1132_v1 = vadd.f32 %v2536_v53, %v1118_v40 }
  0xff   : > { %v1142_v52 = vmul.f32 %v2957_v0, %v2614_v41  ;;  %v1107_v42 = vmul.f32 %v2958_v37, %v2618_v10  ;;  %v2959_v61 = vrot.slane %v2481_v26, %v2497_v33  ;;  %1032 = vmatpush1.msra.mxu1 %v918_v46  ;;  %v1097_v36 = vadd.f32 %v1095_v15, %v1083_v48 }
 0x100   : > { %1810 = vmatmul.mubr.msk.f32.vlgmr.msra.gmra.mxu1 %vm997_vm4, %v627_v55  ;;  %1216 = vmatprep.subr.mxu1 %v1181_v30  ;;  %v1145_v9 = vadd.f32 %v1143_v44, %v1133_v60  ;;  %v1096_v32 = vadd.f32 %v2527_v49, %v1082_v8  ;;  %v2960_v38 = vmov 0.0   ;;  %v2680_v49 = vld [vmem:[%s2914_s2] sm:$0xff]  ;;  %v670_v15 = vrot.slane %v2685_v51, %v2477_v24 }
 0x101   : > { %v1106_v5 = vmul.f32 %v2959_v61, %v2614_v41  ;;  %1217 = vmatpush1.msra.mxu1 %v1180_v59  ;;  %v1144_v31 = vadd.f32 %v1142_v52, %v1132_v1  ;;  %1254 = vmatprep.mubr.f32.mxu1 %v2960_v38  ;;  %v1109_v43 = vadd.f32 %v1107_v42, %v1097_v36 }
 0x102   : > { %1218 = vmatprep.subr.mxu1 %v1145_v9  ;;  %v666_v50 = vrot.slane %v2680_v49, %v2477_v24  ;;  %v692_v16 = vrot.slane %v2680_v49, %v2487_v28  ;;  %v696_v39 = vrot.slane %v2685_v51, %v2487_v28  ;;  %v760_v40 = vrot.slane %v2680_v49, %v2489_v29 }
 0x103   : > { %1219 = vmatpush1.msra.mxu1 %v1144_v31  ;;  %v1108_v53 = vadd.f32 %v1106_v5, %v1096_v32  ;;  %v764_v45 = vrot.slane %v2685_v51, %v2489_v29  ;;  %v717_v54 = vrot.slane %v2680_v49, %v2471_v21  ;;  %v721_v48 = vrot.slane %v2685_v51, %v2471_v21 }
 0x104   : > { %1220 = vmatprep.subr.mxu1 %v1109_v43  ;;  %v742_v17 = vrot.slane %v2680_v49, %v2479_v25  ;;  %v746_v44 = vrot.slane %v2685_v51, %v2479_v25  ;;  %v697_v23 = vmul.f32 %v692_v16, %v2603_v62  ;;  %v698_v30 = vmul.f32 %v696_v39, %v2595_v58 }
 0x105   : > { %v701_v11 = vpop.permute.xlu1 %700  ;;  %v676_v26 = vpop.permute.xlu0 %675  ;;  %1221 = vmatpush1.msra.mxu1 %v1108_v53  ;;  %v765_v55 = vmul.f32 %v760_v40, %v2411_v2  ;;  %v766_v59 = vmul.f32 %v764_v45, %v2417_v3  ;;  %v785_v5 = vrot.slane %v2680_v49, %v2473_v22  ;;  %v789_v9 = vrot.slane %v2685_v51, %v2473_v22 }
 0x106   : > { %1813 = vmatmul.mubr.msk.f32.vlgmr.msra.gmra.mxu1 %vm997_vm4, %v632_v12  ;;  %v703_v37 = vmul.f32 %v701_v11, %v697_v23  ;;  %v704_v42 = vmul.f32 %v701_v11, %v698_v30  ;;  %v747_v58 = vmul.f32 %v742_v17, %v2567_v7  ;;  %v748_v61 = vmul.f32 %v746_v44, %v2563_v6 }
 0x107   : > { %v790_v6 = vmul.f32 %v785_v5, %v2591_v56  ;;  %v810_v40 = vrot.slane %v2680_v49, %v2497_v33  ;;  %v814_v45 = vrot.slane %v2685_v51, %v2497_v33  ;;  %v839_v56 = vrot.slane %v2685_v51, %v2499_v34 }
 0x109   : > { %v655_v13 = vpop.permute.xlu1 %654  ;;  %v657_v57 = vpop.permute.xlu0 %656 }
 0x10a   : > { %v661_v4 = vsel %vm660_vm5, %v655_v13, %v657_v57  ;;  %v662_v63 = vsel %vm660_vm5, %v657_v57, %v655_v13 }
 0x10b   : > { %v671_v35 = vmul.f32 %v666_v50, %v662_v63  ;;  %v672_v18 = vmul.f32 %v670_v15, %v661_v4  ;;  %v791_v15 = vmul.f32 %v789_v9, %v2580_v14  ;;  %v835_v14 = vrot.slane %v2680_v49, %v2499_v34 }
 0x10d   : > { %v726_v19 = vpop.permute.xlu1 %725  ;;  %v708_v27 = vpop.permute.xlu0 %707  ;;  %v678_v47 = vmul.f32 %v676_v26, %v671_v35  ;;  %v679_v8 = vmul.f32 %v676_v26, %v672_v18 }
 0x10f   : > { %v705_v36 = vadd.f32 %v703_v37, %v678_v47  ;;  %v706_v32 = vadd.f32 %v704_v42, %v679_v8  ;;  %v840_v47 = vmul.f32 %v835_v14, %v2614_v41  ;;  %v841_v8 = vmul.f32 %v839_v56, %v2618_v10  ;;  %v1807_v10 = vld [vmem:[%s2914_s2 + $0x18] ss:$0 sm:$0xff] }
 0x111   : > { %v710_v0 = vpop.permute.xlu1 %709  ;;  %v751_v62 = vpop.permute.xlu0 %750 }
 0x112   : > { %v712_v52 = vsel %vm711_vm6, %v708_v27, %v710_v0  ;;  %v713_v46 = vsel %vm711_vm6, %v710_v0, %v708_v27  ;;  %v753_v43 = vmul.f32 %v751_v62, %v747_v58  ;;  %v754_v53 = vmul.f32 %v751_v62, %v748_v61  ;;  %v1806_v62 = vld [vmem:[%s2914_s2 + $0x10] ss:$0 sm:$0xff] }
 0x113   : > { %v722_v60 = vmul.f32 %v717_v54, %v713_v46  ;;  %v723_v1 = vmul.f32 %v721_v48, %v712_v52 }
 0x115   : > { %v728_v2 = vmul.f32 %v726_v19, %v722_v60  ;;  %v729_v31 = vmul.f32 %v726_v19, %v723_v1  ;;  %v769_v3 = vpop.permute.xlu1 %768 }
 0x116   : > { %v771_v26 = vmul.f32 %v769_v3, %v765_v55  ;;  %v772_v13 = vmul.f32 %v769_v3, %v766_v59  ;;  %v819_v27 = vpop.permute.xlu0 %818 }
 0x117   : > { %v730_v12 = vadd.f32 %v728_v2, %v705_v36  ;;  %v731_v11 = vadd.f32 %v729_v31, %v706_v32 }
 0x119   : > { %v755_v7 = vadd.f32 %v753_v43, %v730_v12  ;;  %v756_v50 = vadd.f32 %v754_v53, %v731_v11 }
 0x11a   : > { %v794_v57 = vpop.permute.xlu1 %793 }
 0x11b   : > { %v773_v4 = vadd.f32 %v771_v26, %v755_v7  ;;  %v774_v63 = vadd.f32 %v772_v13, %v756_v50  ;;  %v796_v16 = vmul.f32 %v794_v57, %v790_v6  ;;  %v797_v39 = vmul.f32 %v794_v57, %v791_v15  ;;  %v844_v30 = vpop.permute.xlu0 %843 }
 0x11c   : > { %v846_v49 = vmul.f32 %v844_v30, %v840_v47  ;;  %v847_v46 = vmul.f32 %v844_v30, %v841_v8 }
 0x11d   : > { %v798_v35 = vadd.f32 %v796_v16, %v773_v4  ;;  %v799_v18 = vadd.f32 %v797_v39, %v774_v63 }
 0x11e   : > { %v801_v19 = vpop.permute.xlu1 %800 }
 0x11f   : > { %v853_v1 = vpop.permute.xlu0 %852 }
 0x122   : > { %v803_v54 = vpop.permute.xlu1 %802 }
 0x123   : > { %v805_v48 = vsel %vm804_vm7, %v801_v19, %v803_v54  ;;  %v806_v17 = vsel %vm804_vm7, %v803_v54, %v801_v19  ;;  %v995_v3 = vpop.permute.xlu0 %994 }
 0x124   : > { %v815_v44 = vmul.f32 %v810_v40, %v805_v48  ;;  %v816_v23 = vmul.f32 %v814_v45, %v806_v17 }
 0x126   : > { %v821_v0 = vmul.f32 %v819_v27, %v815_v44  ;;  %v822_v52 = vmul.f32 %v819_v27, %v816_v23  ;;  %v869_v42 = vpop.permute.xlu1 %868 }
 0x128   : > { %v823_v55 = vadd.f32 %v821_v0, %v798_v35  ;;  %v824_v51 = vadd.f32 %v822_v52, %v799_v18  ;;  %v1272_v15 = vpop.permute.xlu0 %1271 }
 0x12a   : > { %v848_v59 = vadd.f32 %v846_v49, %v823_v55  ;;  %v849_v37 = vadd.f32 %v847_v46, %v824_v51  ;;  %v851_v60 = vpop.permute.xlu1 %850 }
 0x12b   : > { %v855_v41 = vsel %vm854_vm8, %v851_v60, %v853_v1  ;;  %v856_v58 = vsel %vm854_vm8, %v853_v1, %v851_v60 }
 0x12c   : > { %v865_v61 = vmul.f32 %v1806_v62, %v855_v41  ;;  %v866_v9 = vmul.f32 %v1807_v10, %v856_v58 }
 0x12e   : > { %v878_v5 = vpop.permute.xlu1 %877  ;;  %v871_v36 = vmul.f32 %v869_v42, %v865_v61  ;;  %v872_v32 = vmul.f32 %v869_v42, %v866_v9 }
 0x130   : > { %v873_v31 = vadd.f32 %v871_v36, %v848_v59  ;;  %v874_v43 = vadd.f32 %v872_v32, %v849_v37  ;;  %v1817_v59 = vld [vmem:[#allocation10 + $0x18] ss:$0 sm:$0xff]  ;;  %v1816_v37 = vld [vmem:[#allocation10 + $0x10] ss:$0 sm:$0xff]  ;;  %v638_v36 = vld [vmem:[%s2922_s10] sm:$0x3] }
 0x131   : > { %v2793_v32 = vld [vmem:[#allocation10] sm:$0xff] }
 0x132   : > { %v1185_v2 = vpop.permute.xlu1 %1184  ;;  %v880_v12 = vadd.f32 %v878_v5, %v873_v31  ;;  %v881_v7 = vadd.f32 %v878_v5, %v874_v43 }
 0x134   : > { %v882_v57 = vmax.f32 %v880_v12, 0.0  ;;  %v883_v39 = vmax.f32 %v881_v7, 0.0 }
 0x136   : > { %v1266_v26 = vpop.permute.xlu1 %1265 }
 0x137   : > { %v1268_v27 = vmul.f32 %v1266_v26, %v882_v57  ;;  %v1269_v56 = vmul.f32 %v1266_v26, %v883_v39 }
 0x13b   : > { %v1280_v16 = vpop.permute.xlu1 %1279 }
 0x140   : > { %v1289_v44 = vpop.permute.xlu1 %1288 }
 0x1c0   : > { %v1067_v53 = vpop.f32.mrf.mxu1 }
 0x1c1   : > { %v1068_v11 = vadd.f32 %v1067_v53, %v995_v3 }
 0x1c2   : > { %v1069_v13 = vpop.f32.mrf.mxu1 }
 0x1c3   : > { %v1072_v50 = vmax.f32 %v1068_v11, 0.0  ;;  %v1070_v6 = vadd.f32 %v1069_v13, %v995_v3  ;;  %v1530_v3 = vrot.slane %v2793_v32, %v2499_v34 }
 0x1c5   : > { %v1073_v4 = vmax.f32 %v1070_v6, 0.0  ;;  %v1274_v35 = vmul.f32 %v1272_v15, %v1072_v50  ;;  %v1514_v6 = vrot.slane %v2793_v32, %v2497_v33 }
 0x1c6   : > { %v1256_v63 = vpop.f32.mrf.mxu1 }
 0x1c7   : > { %v1257_v18 = vadd.f32 %v1256_v63, %v1185_v2  ;;  %v1275_v40 = vmul.f32 %v1272_v15, %v1073_v4  ;;  %v1276_v54 = vadd.f32 %v1274_v35, %v1268_v27 }
 0x1c8   : > { %v1258_v19 = vpop.f32.mrf.mxu1 }
 0x1c9   : > { %v1261_v45 = vmax.f32 %v1257_v18, 0.0  ;;  %v1259_v14 = vadd.f32 %v1258_v19, %v1185_v2  ;;  %v1277_v23 = vadd.f32 %v1275_v40, %v1269_v56  ;;  %v2795_v2 = vld [vmem:[#allocation10 + $0x8] sm:$0xff]  ;;  %v1498_v18 = vrot.slane %v2793_v32, %v2473_v22 }
 0x1ca   : > { %v1534_v43 = vrot.slane %v2795_v2, %v2499_v34  ;;  %v1518_v26 = vrot.slane %v2795_v2, %v2497_v33  ;;  %v1486_v56 = vrot.slane %v2795_v2, %v2489_v29 }
 0x1cb   : > { %v1262_v48 = vmax.f32 %v1259_v14, 0.0  ;;  %v1282_v17 = vmul.f32 %v1280_v16, %v1261_v45 }
 0x1cd   : > { %v1283_v30 = vmul.f32 %v1280_v16, %v1262_v48  ;;  %v1284_v47 = vadd.f32 %v1282_v17, %v1276_v54  ;;  %v1502_v16 = vrot.slane %v2795_v2, %v2473_v22  ;;  %v1482_v48 = vrot.slane %v2793_v32, %v2489_v29 }
 0x1cf   : > { %v1285_v8 = vadd.f32 %v1283_v30, %v1277_v23  ;;  %v1291_v0 = vadd.f32 %v1289_v44, %v1284_v47 }
 0x1d1   : > { %v1292_v52 = vadd.f32 %v1289_v44, %v1285_v8  ;;  %v2754_v49 = vmax.f32 %v1291_v0, 0.0 }
 0x1d3   : > { %v2756_v46 = vmax.f32 %v1292_v52, 0.0  ;;  %1537 = vrot.lane.b32.xlu1 %v2754_v49, %s2184_s0  ;;  %v1487_v8 = vmul.f32 %v1482_v48, %v2754_v49 }
 0x1d5   : > { %v1295_v55 = vadd.f32 %v2756_v46, %v2754_v49  ;;  %v1488_v47 = vmul.f32 %v1486_v56, %v2756_v46  ;;  %v1424_v56 = vrot.slane %v2793_v32, %v2477_v24 }
 0x1d7   : > { %1539 = vrot.lane.b32.xlu1 %v2756_v46, %s2184_s0  ;;  %1296 = vadd.xlane.f32.xlu0 %v1295_v55  ;;  %s2961_s0 = smov 15  }
 0x1db   : > { %1523 = vrot.lane.b32.xlu1 %v2756_v46, %s2173_s30 }
 0x1df   : > { %1505 = vrot.lane.b32.xlu1 %v2754_v49, %s2182_s19 }
 0x1e3   : > { %1507 = vrot.lane.b32.xlu1 %v2756_v46, %s2182_s19 }
 0x1e7   : > { %1489 = vrot.lane.b32.xlu1 %v2754_v49, %s2169_s20 }
 0x1eb   : > { %1491 = vrot.lane.b32.xlu1 %v2756_v46, %s2169_s20 }
 0x1ed   : > { %1521 = vrot.lane.b32.xlu0 %v2754_v49, %s2173_s30 }
 0x1f1   : > { %1463 = vrot.lane.b32.xlu0 %v2754_v49, %s2170_s26 }
 0x1f5   : > { %1447 = vrot.lane.b32.xlu0 %v2754_v49, %s2961_s0 }
 0x1f9   : > { %1431 = vrot.lane.b32.xlu0 %v2754_v49, %s2962_s23 }
 0x1fd   : > { %1415 = vrot.lane.b32.xlu0 %v2754_v49, %s2963_s29 }
 0x245   : > { %v1538_v51 = vpop.permute.xlu1 %1537 }
 0x249   : > { %v1540_v42 = vpop.permute.xlu1 %1539 }
 0x24a   : > { %v1541_v60 = vsel %vm854_vm8, %v1538_v51, %v1540_v42  ;;  %v1542_v1 = vsel %vm854_vm8, %v1540_v42, %v1538_v51 }
 0x24b   : > { %v1552_v62 = vmul.f32 %v1817_v59, %v1542_v1  ;;  %v1551_v41 = vmul.f32 %v1816_v37, %v1541_v60 }
 0x24d   : > { %1574 = vmatprep.subr.mxu0 %v1552_v62  ;;  %v1524_v10 = vpop.permute.xlu1 %1523 }
 0x24e   : > { %1575 = vmatpush1.msra.mxu0 %v1551_v41 }
 0x251   : > { %v1506_v58 = vpop.permute.xlu1 %1505 }
 0x255   : > { %v1508_v61 = vpop.permute.xlu1 %1507 }
 0x256   : > { %v1510_v15 = vsel %vm804_vm7, %v1508_v61, %v1506_v58  ;;  %v1509_v63 = vsel %vm804_vm7, %v1506_v58, %v1508_v61 }
 0x257   : > { %v1520_v45 = vmul.f32 %v1518_v26, %v1510_v15  ;;  %v1519_v54 = vmul.f32 %v1514_v6, %v1509_v63  ;;  %v1456_v15 = vrot.slane %v2793_v32, %v2471_v21 }
 0x259   : > { %v1490_v5 = vpop.permute.xlu1 %1489 }
 0x25d   : > { %v1492_v13 = vpop.permute.xlu1 %1491 }
 0x25e   : > { %v1494_v19 = vsel %vm779_vm0, %v1492_v13, %v1490_v5  ;;  %v1493_v14 = vsel %vm779_vm0, %v1490_v5, %v1492_v13 }
 0x25f   : > { %v1504_v17 = vmul.f32 %v1502_v16, %v1494_v19  ;;  %v1503_v44 = vmul.f32 %v1498_v18, %v1493_v14  ;;  %v1440_v18 = vrot.slane %v2793_v32, %v2487_v28 }
 0x260   : > { %v2788_v9 = vpop.xlane.xlu0 %1296 }
 0x261   : > { %v1307_v31 = vrot.slane %v2788_v9, %v2487_v28  ;;  %v1301_v53 = vrot.slane %v2788_v9, %v2477_v24  ;;  %v1317_v11 = vrot.slane %v2788_v9, %v2471_v21  ;;  %v1327_v40 = vrot.slane %v2788_v9, %v2479_v25 }
 0x262   : > { %v1337_v30 = vrot.slane %v2788_v9, %v2489_v29  ;;  %v1347_v52 = vrot.slane %v2788_v9, %v2473_v22  ;;  %v1357_v29 = vrot.slane %v2788_v9, %v2497_v33  ;;  %v1367_v59 = vrot.slane %v2788_v9, %v2499_v34  ;;  %v639_v34 = vld [vmem:[%s2923_s11] sm:$0x3] }
 0x263   : > { %v1308_v12 = vmul.f32 %v1307_v31, %v638_v36  ;;  %v1302_v50 = vmul.f32 %v1301_v53, %v638_v36  ;;  %v1318_v27 = vmul.f32 %v1317_v11, %v638_v36  ;;  %v1328_v23 = vmul.f32 %v1327_v40, %v638_v36 }
 0x264   : > { %v1522_v7 = vpop.permute.xlu0 %1521  ;;  %v1338_v0 = vmul.f32 %v1337_v30, %v638_v36  ;;  %v1348_v55 = vmul.f32 %v1347_v52, %v638_v36  ;;  %v1358_v51 = vmul.f32 %v1357_v29, %v638_v36  ;;  %v1368_v49 = vmul.f32 %v1367_v59, %v638_v36 }
 0x265   : > { %v1525_v57 = vsel %vm829_vm3, %v1522_v7, %v1524_v10  ;;  %v1526_v4 = vsel %vm829_vm3, %v1524_v10, %v1522_v7  ;;  %1310 = vrot.lane.b32.xlu1 %v1308_v12, %s2169_s20  ;;  %v1303_v42 = vadd.f32 %v1302_v50, %v639_v34 }
 0x266   : > { %v1535_v39 = vmul.f32 %v1530_v3, %v1525_v57  ;;  %v1536_v35 = vmul.f32 %v1534_v43, %v1526_v4  ;;  %v1472_v3 = vrot.slane %v2793_v32, %v2479_v25  ;;  %v1476_v43 = vrot.slane %v2795_v2, %v2479_v25  ;;  %v643_v32 = vld [vmem:[%s2925_s13 + $0x8] sm:$0xff] }
 0x267   : > { %v1460_v57 = vrot.slane %v2795_v2, %v2471_v21  ;;  %v1444_v21 = vrot.slane %v2795_v2, %v2487_v28 }
 0x268   : > { %1576 = vmatprep.subr.mxu0 %v1536_v35  ;;  %v1464_v9 = vpop.permute.xlu0 %1463 }
 0x269   : > { %1320 = vrot.lane.b32.xlu1 %v1318_v27, %s2185_s27  ;;  %1577 = vmatpush1.msra.mxu0 %v1535_v39 }
 0x26a   : > { %1578 = vmatprep.subr.mxu0 %v1520_v45 }
 0x26b   : > { %1579 = vmatpush1.msra.mxu0 %v1519_v54  ;;  %v1428_v54 = vrot.slane %v2795_v2, %v2477_v24  ;;  %v641_v2 = vld [vmem:[%s2924_s12 + $0x8] sm:$0xf] }
 0x26c   : > { %1580 = vmatprep.subr.mxu0 %v1504_v17  ;;  %v1448_v12 = vpop.permute.xlu0 %1447 }
 0x26d   : > { %1330 = vrot.lane.b32.xlu1 %v1328_v23, %s2186_s18  ;;  %1581 = vmatpush1.msra.mxu0 %v1503_v44 }
 0x26e   : > { %1582 = vmatprep.subr.mxu0 %v1488_v47  ;;  %v642_v47 = vld [vmem:[%s2925_s13] sm:$0xff] }
 0x26f   : > { %1583 = vmatpush1.msra.mxu0 %v1487_v8 }
 0x270   : > { %v1432_v16 = vpop.permute.xlu0 %1431 }
 0x271   : > { %1340 = vrot.lane.b32.xlu1 %v1338_v0, %s2187_s22 }
 0x274   : > { %v1416_v48 = vpop.permute.xlu0 %1415 }
 0x275   : > { %1350 = vrot.lane.b32.xlu1 %v1348_v55, %s2188_s17 }
 0x279   : > { %1360 = vrot.lane.b32.xlu1 %v1358_v51, %s2189_s25 }
 0x27d   : > { %1370 = vrot.lane.b32.xlu1 %v1368_v49, %s2190_s28 }
 0x281   : > { %1465 = vrot.lane.b32.xlu1 %v2756_v46, %s2170_s26 }
 0x285   : > { %1449 = vrot.lane.b32.xlu1 %v2756_v46, %s2961_s0 }
 0x289   : > { %1433 = vrot.lane.b32.xlu1 %v2756_v46, %s2962_s23 }
 0x28d   : > { %1417 = vrot.lane.b32.xlu1 %v2756_v46, %s2963_s29 }
 0x2d7   : > { %v1311_v22 = vpop.permute.xlu1 %1310 }
 0x2d8   : > { %v1313_v1 = vadd.f32 %v1311_v22, %v1303_v42 }
 0x2db   : > { %v1321_v33 = vpop.permute.xlu1 %1320 }
 0x2dc   : > { %v1323_v62 = vadd.f32 %v1321_v33, %v1313_v1 }
 0x2df   : > { %v1331_v37 = vpop.permute.xlu1 %1330 }
 0x2e0   : > { %v1333_v10 = vadd.f32 %v1331_v37, %v1323_v62 }
 0x2e3   : > { %v1341_v60 = vpop.permute.xlu1 %1340 }
 0x2e4   : > { %v1343_v58 = vadd.f32 %v1341_v60, %v1333_v10 }
 0x2e7   : > { %v1351_v41 = vpop.permute.xlu1 %1350 }
 0x2e8   : > { %v1353_v5 = vadd.f32 %v1351_v41, %v1343_v58 }
 0x2eb   : > { %v1361_v61 = vpop.permute.xlu1 %1360 }
 0x2ec   : > { %v1363_v36 = vadd.f32 %v1361_v61, %v1353_v5  ;;  %v650_v61 = vld [vmem:[#allocation12 + $0x10] sm:$0xff]  ;;  %v651_v5 = vld [vmem:[#allocation12 + $0x18] sm:$0xff] }
 0x2ef   : > { %v1371_v31 = vpop.permute.xlu1 %1370 }
 0x2f0   : > { %v1373_v46 = vadd.f32 %v1371_v31, %v1363_v36  ;;  %v648_v36 = vld [vmem:[#allocation12] sm:$0xff]  ;;  %v649_v31 = vld [vmem:[#allocation12 + $0x8] sm:$0xff] }
 0x2f2   : > { %v1374_v53 = vmax.f32 %v1373_v46, 0.0 }
 0x2f3   : > { %v1466_v11 = vpop.permute.xlu1 %1465 }
 0x2f4   : > { %v1386_v26 = vrot.slane %v1374_v53, %v2487_v28  ;;  %v1467_v13 = vsel %vm736_vm1, %v1464_v9, %v1466_v11  ;;  %v1468_v7 = vsel %vm736_vm1, %v1466_v11, %v1464_v9 }
 0x2f5   : > { %v1477_v50 = vmul.f32 %v1472_v3, %v1468_v7  ;;  %v1478_v6 = vmul.f32 %v1476_v43, %v1467_v13 }
 0x2f6   : > { %1388 = vrot.lane.b32.xlu0 %v1386_v26, %s2170_s26 }
 0x2f7   : > { %v1450_v25 = vpop.permute.xlu1 %1449  ;;  %1584 = vmatprep.subr.mxu0 %v1478_v6 }
 0x2f8   : > { %v1451_v4 = vsel %vm711_vm6, %v1448_v12, %v1450_v25  ;;  %v1452_v63 = vsel %vm711_vm6, %v1450_v25, %v1448_v12  ;;  %1585 = vmatpush1.msra.mxu0 %v1477_v50 }
 0x2f9   : > { %v1461_v39 = vmul.f32 %v1456_v15, %v1452_v63  ;;  %v1462_v35 = vmul.f32 %v1460_v57, %v1451_v4 }
 0x2fb   : > { %v1434_v19 = vpop.permute.xlu1 %1433  ;;  %1586 = vmatprep.subr.mxu0 %v1462_v35 }
 0x2fc   : > { %v1435_v27 = vsel %vm686_vm2, %v1432_v16, %v1434_v19  ;;  %v1436_v40 = vsel %vm686_vm2, %v1434_v19, %v1432_v16  ;;  %1587 = vmatpush1.msra.mxu0 %v1461_v39 }
 0x2fd   : > { %v1445_v45 = vmul.f32 %v1440_v18, %v1436_v40  ;;  %v1446_v14 = vmul.f32 %v1444_v21, %v1435_v27 }
 0x2ff   : > { %v1418_v17 = vpop.permute.xlu1 %1417  ;;  %1588 = vmatprep.subr.mxu0 %v1446_v14 }
 0x300   : > { %v1419_v28 = vsel %vm660_vm5, %v1416_v48, %v1418_v17  ;;  %v1420_v44 = vsel %vm660_vm5, %v1418_v17, %v1416_v48  ;;  %1589 = vmatpush1.msra.mxu0 %v1445_v45 }
 0x301   : > { %v1429_v23 = vmul.f32 %v1424_v56, %v1420_v44  ;;  %v1430_v30 = vmul.f32 %v1428_v54, %v1419_v28 }
 0x303   : > { %1590 = vmatprep.subr.mxu0 %v1430_v30 }
 0x304   : > { %1591 = vmatpush1.msra.mxu0 %v1429_v23 }
 0x305   : > { %1818 = vmatmul.mubr.msk.f32.vlgmr.msra.gmra.mxu0 %vm1553_vm9, %v642_v47 }
 0x306   : > { %1630 = vmatprep.mubr.f32.mxu0 %v2960_v38  ;;  %v1378_v38 = vrot.slane %v1374_v53, %v2477_v24 }
 0x308   : > { %v1380_v55 = vmul.f32 %v1378_v38, %v641_v2  ;;  %v1379_v29 = vmul.f32 %v1378_v38, %v640_v20 }
 0x309   : > { %1819 = vmatmul.mubr.msk.f32.gmra.mxu0 %vm1553_vm9, %v643_v32 }
 0x368   : > { %v1389_v8 = vpop.permute.xlu0 %1388 }
 0x369   : > { %v1391_v0 = vmul.f32 %v1389_v8, %v640_v20  ;;  %v1392_v52 = vmul.f32 %v1389_v8, %v641_v2 }
 0x36b   : > { %1397 = vrot.lane.b32.xlu0 %v1392_v52, %s2169_s20  ;;  %1395 = vrot.lane.b32.xlu1 %v1391_v0, %s2169_s20  ;;  %s1823_s20 = sshll.u32 %s2965_s24, 5 }
 0x36c   : > { %s617_s30 = scalar_lea.vmem %s2928_s16, %s1823_s20 }
 0x3c5   : > { %v1626_v24 = vpop.f32.mrf.mxu0 }
 0x3c6   : > { %v1627_v43 = vadd.f32 %v1626_v24, %v648_v36 }
 0x3c7   : > { %v1628_v10 = vpop.f32.mrf.mxu0 }
 0x3c8   : > { %v1629_v53 = vadd.f32 %v1628_v10, %v649_v31  ;;  %v1637_v26 = vmax.f32 %v1627_v43, 0.0 }
 0x3c9   : > { %v1632_v58 = vpop.f32.mrf.mxu0 }
 0x3ca   : > { %v1633_v46 = vadd.f32 %v1632_v58, %v650_v61  ;;  %v1638_v13 = vmax.f32 %v1629_v53, 0.0 }
 0x3cb   : > { %v1634_v9 = vpop.f32.mrf.mxu0 }
 0x3cc   : > { %v1635_v3 = vadd.f32 %v1634_v9, %v651_v5  ;;  %v1639_v12 = vmax.f32 %v1633_v46, 0.0 }
 0x3ce   : > { %v1640_v11 = vmax.f32 %v1635_v3, 0.0 }
 0x3dd   : > { %v1398_v51 = vpop.permute.xlu0 %1397  ;;  %v1396_v59 = vpop.permute.xlu1 %1395 }
 0x3de   : > { %v1402_v49 = vadd.f32 %v1398_v51, %v1380_v55  ;;  %v1401_v22 = vadd.f32 %v1396_v59, %v1379_v29 }
 0x3e0   : > { %v1815_v33 = vmul.f32 -1.442695, %v1402_v49  ;;  %v1814_v34 = vmul.f32 -1.442695, %v1401_v22 }
 0x3e2   : > { %1944 = vpow2.f32 %v1815_v33 }
 0x3e3   : > { %1946 = vpow2.f32 %v1814_v34 }
 0x3ef   : > { %v1945_v37 = vpop.eup %1944 }
 0x3f0   : > { %v1947_v42 = vpop.eup %1946  ;;  %v1410_v60 = vadd.f32 1.0, %v1945_v37 }
 0x3f1   : > { %v1409_v1 = vadd.f32 1.0, %v1947_v42 }
 0x3f2   : > { %1948 = vrcp.f32 %v1410_v60 }
 0x3f3   : > { %1950 = vrcp.f32 %v1409_v1 }
 0x3ff   : > { %v1949_v62 = vpop.eup %1948 }
 0x400   : > { %v1951_v41 = vpop.eup %1950  ;;  %1648 = vperm.xlu0 %1943, %v1949_v62  }
 0x401   : > { %1643 = vperm.xlu1 %1942, %v1951_v41  }
 0x47b   : > { %v1649_v7 = vpop.permute.xlu0 %1648 }
 0x47c   : > { %v1653_v50 = vmul.f32 %v1649_v7, %v1639_v12  ;;  %v1654_v6 = vmul.f32 %v1649_v7, %v1640_v11  ;;  %v1644_v15 = vpop.permute.xlu1 %1643 }
 0x47d   : > { %v1651_v57 = vmul.f32 %v1644_v15, %v1637_v26  ;;  %v1652_v25 = vmul.f32 %v1644_v15, %v1638_v13 }
 0x47e   : > { %1657 = vst [vmem:[%s617_s30 + $0x10] sm:$0xf] %v1653_v50  ;;  %1658 = vst [vmem:[%s617_s30 + $0x18] sm:$0xf] %v1654_v6 }
 0x47f   : > { %1655 = vst [vmem:[%s617_s30] sm:$0xff] %v1651_v57  ;;  %1656 = vst [vmem:[%s617_s30 + $0x8] sm:$0xff] %v1652_v25 }
 0x480 PF: > { %s30_s21 = sadd.s32 1, %s2156_s21  }
 0x481   : > { %p27_p10 = scmp.ge.s32.totalorder %s30_s21, 4  }
 0x483   :  { %29 = sbr.rel (!%p27_p10) target bundleno = 6 (0x6), region = 143 }
 0x488   :  { %1680 = vsyncpa [#allocation3], 1 }
 0x489   :  { %1682 = vsyncpa [#allocation3 + $0x1], 1 }
 0x48a   :  { %1683 = vsyncpa [#allocation5], 1 }
 0x48b   :  { %1684 = vsyncpa [#allocation8], 1 }
 0x48c   :  { %1685 = vsyncpa [#allocation11], 1 }

</bundles_post_ra>
